<compile_context>
chip_gen: v5e
topology: v5e:2x2
jax: 0.10.0
libtpu: 0.0.40
codegen_flags: <defaults>
</compile_context>

<pallas_src>
import functools
import math

import jax
import jax.numpy as jnp
import numpy as np
from jax.experimental import pallas as pl
from jax.experimental.pallas import tpu as pltpu


def _poly_env_kernel(d_ref, out_ref, *, p, a, b, c):
    # Elementwise VPU work on one (tile_rows, tile_cols) block.
    # Upcast to f32 for the polynomial; store in the caller's dtype.
    d = d_ref[...].astype(jnp.float32)
    dp = d ** p                                  # integer_pow -> repeated multiplies
    env = 1.0 + dp * (a + d * (b + c * d))       # Horner: a*d^p + b*d^(p+1) + c*d^(p+2)
    out_ref[...] = jnp.where(d < 1.0, env, 0.0).astype(out_ref.dtype)


def _poly_env_2d(d2, p, a, b, c, *, block_rows, lane):
    """Run the Pallas kernel over a 2D array (rows, cols); same shape & dtype out."""
    rows, cols = d2.shape
    dtype = d2.dtype
    itemsize = jnp.dtype(dtype).itemsize

    # Lane (last-dim) tiling: full dim if it fits, else multiple-of-128 tiles
    # (partial last column block is masked by Pallas).
    tile_cols = cols if cols <= lane else lane

    # Row tiling: target ~2 MiB blocks (safe on every generation once
    # double-buffered: 2 MiB x {in,out} x 2 buffers = 8 MiB scoped VMEM).
    if block_rows is None:
        target_bytes = 2 << 20
        block_rows = max(32, (target_bytes // (tile_cols * itemsize)) // 32 * 32)

    slab_bytes = rows * cols * itemsize
    if rows <= block_rows:
        if slab_bytes > (512 << 10) and rows >= 64:
            # Never run big slabs with a single grid step: split so the input
            # and output DMAs overlap and v7x can use both TensorCores.
            tile_rows = max(32, (rows // 2) // 32 * 32)
        else:
            tile_rows = rows            # single block (full dim allowed)
    else:
        tile_rows = block_rows          # multiple of 32 (sublane-aligned)

    grid = (pl.cdiv(rows, tile_rows), pl.cdiv(cols, tile_cols))
    kernel = functools.partial(_poly_env_kernel, p=p, a=a, b=b, c=c)

    return pl.pallas_call(
        kernel,
        out_shape=jax.ShapeDtypeStruct((rows, cols), dtype),
        grid_spec=pltpu.PrefetchScalarGridSpec(
            num_scalar_prefetch=0,
            grid=grid,
            in_specs=[pl.BlockSpec((tile_rows, tile_cols), lambda i, j: (i, j))],
            out_specs=pl.BlockSpec((tile_rows, tile_cols), lambda i, j: (i, j)),
        ),
        compiler_params=pltpu.CompilerParams(
            dimension_semantics=("parallel", "parallel"),
        ),
    )(d2)


def polynomial_envelope(d_scaled, exponent, *, block_rows=None, lane=1024,
                        min_pallas_elems=16384):
    """Elementwise polynomial envelope. Accepts any shape; returns same shape & dtype."""
    assert exponent > 0
    p = int(exponent)
    a = -(p + 1) * (p + 2) / 2.0
    b = float(p * (p + 2))
    c = -p * (p + 1) / 2.0

    orig_shape = d_scaled.shape
    dtype = d_scaled.dtype
    n = math.prod(orig_shape)

    # Tiny / empty inputs: pure-jnp fallback (pallas_call fixed cost dominates).
    # TODO(synk): for best end-to-end perf, fuse this envelope into its consumer
    # (the radial-basis multiply) instead of running it as a standalone op.
    if n == 0 or n < min_pallas_elems:
        d32 = d_scaled.astype(jnp.float32)
        env = 1.0 + (d32 ** p) * (a + d32 * (b + c * d32))
        return jnp.where(d32 < 1.0, env, 0.0).astype(dtype)

    # Fast path: last dim already lane-aligned -> block over the original layout.
    # No flatten-to-new-tiling, no pad, no slice: exactly one HBM read + write.
    if len(orig_shape) >= 2 and orig_shape[-1] % 128 == 0:
        cols = orig_shape[-1]
        rows = n // cols
        d2 = d_scaled.reshape(rows, cols)        # leading-dim collapse only
        out2 = _poly_env_2d(d2, p, a, b, c, block_rows=block_rows, lane=lane)
        return out2.reshape(orig_shape)

    # General path: flatten, pick a lane-dense cols. Pad (one small copy) only
    # when no multiple of 128 divides n; partial row blocks are Pallas-masked.
    d_flat = d_scaled.reshape(-1)
    if n % 128 == 0:
        cols = 128 * math.gcd(n // 128, lane // 128)
        pad = 0
    else:
        cols = min(lane, 128 * pl.cdiv(n, 128))
        pad = (-n) % cols
        # Pad value is irrelevant (padded outputs are sliced off); 1 lands in
        # the d >= 1 -> 0 branch so nothing non-finite is ever produced.
        d_flat = jnp.pad(d_flat, (0, pad), constant_values=1)
    rows = (n + pad) // cols
    d2 = d_flat.reshape(rows, cols)
    out2 = _poly_env_2d(d2, p, a, b, c, block_rows=block_rows, lane=lane)
    out_flat = out2.reshape(-1)
    if pad:
        out_flat = out_flat[:n]
    return out_flat.reshape(orig_shape)


def _reference(d_scaled, exponent):
    """Pure-JAX reference mirroring the torch forward exactly (computed in f32)."""
    p = exponent
    a = -(p + 1) * (p + 2) / 2.0
    b = float(p * (p + 2))
    c = -p * (p + 1) / 2.0
    d32 = d_scaled.astype(jnp.float32)
    env = 1.0 + a * d32 ** p + b * d32 ** (p + 1) + c * d32 ** (p + 2)
    return jnp.where(d32 < 1.0, env, jnp.zeros_like(env)).astype(d_scaled.dtype)


if __name__ == "__main__":
    exponent = 5
    key = jax.random.PRNGKey(0)
    k1, k2, k3 = jax.random.split(key, 3)

    # 1) Lane-aligned 2D input -> Pallas fast path, multi-block grid (2 steps).
    d_a = jax.random.uniform(k1, (640, 256), dtype=jnp.float32, minval=0.0, maxval=1.5)
    out_a = jax.block_until_ready(polynomial_envelope(d_a, exponent))
    np.testing.assert_allclose(np.asarray(out_a), np.asarray(_reference(d_a, exponent)),
                               rtol=1e-5, atol=1e-5)
    assert out_a.shape == d_a.shape and out_a.dtype == d_a.dtype

    # 2) Tiny edge list (n=300) -> pure-jnp fallback path.
    d_b = jax.random.uniform(k2, (300,), dtype=jnp.float32, minval=0.0, maxval=1.5)
    out_b = jax.block_until_ready(polynomial_envelope(d_b, exponent))
    np.testing.assert_allclose(np.asarray(out_b), np.asarray(_reference(d_b, exponent)),
                               rtol=1e-5, atol=1e-5)
    assert out_b.shape == d_b.shape and out_b.dtype == d_b.dtype

    # 3) Non-lane-aligned shape (n % 128 != 0) -> general padded Pallas path.
    d_c = jax.random.uniform(k3, (125, 160), dtype=jnp.float32, minval=0.0, maxval=1.5)
    out_c = jax.block_until_ready(polynomial_envelope(d_c, exponent))
    np.testing.assert_allclose(np.asarray(out_c), np.asarray(_reference(d_c, exponent)),
                               rtol=1e-5, atol=1e-5)
    assert out_c.shape == d_c.shape and out_c.dtype == d_c.dtype

    # 4) bf16 caller: dtype preserved over HBM, f32 math inside the kernel.
    d_d = d_a.astype(jnp.bfloat16)
    out_d = jax.block_until_ready(polynomial_envelope(d_d, exponent))
    np.testing.assert_allclose(np.asarray(out_d, dtype=np.float32),
                               np.asarray(_reference(d_d, exponent), dtype=np.float32),
                               rtol=1e-2, atol=1e-2)
    assert out_d.shape == d_d.shape and out_d.dtype == d_d.dtype

    print("KERNEL_OK")
</pallas_src>

<mosaic_0001>
module attributes {stable_mosaic.version = 11 : i64} {
  func.func @_poly_env_kernel(%arg0: i32, %arg1: i32, %arg2: memref<320x256xf32, #tpu.memory_space<vmem>>, %arg3: memref<320x256xf32, #tpu.memory_space<vmem>>) attributes {dimension_semantics = [#tpu.dimension_semantics<parallel>, #tpu.dimension_semantics<parallel>], iteration_bounds = array<i64: 2, 1>, scalar_prefetch = 0 : i64, scratch_operands = 0 : i64, tpu.core_type = #tpu.core_type<tc>, window_params = [{transform_indices = @transform_0, window_bounds = array<i64: 320, 256>}, {transform_indices = @transform_1, window_bounds = array<i64: 320, 256>}]} {
    %c0 = arith.constant 0 : index
    %c0_0 = arith.constant 0 : index
    %0 = vector.load %arg2[%c0, %c0_0] : memref<320x256xf32, #tpu.memory_space<vmem>>, vector<320x256xf32>
    %1 = arith.mulf %0, %0 : vector<320x256xf32>
    %2 = arith.mulf %1, %1 : vector<320x256xf32>
    %3 = arith.mulf %0, %2 : vector<320x256xf32>
    %cst = arith.constant -1.500000e+01 : f32
    %4 = vector.broadcast %cst : f32 to vector<320x256xf32>
    %5 = arith.mulf %4, %0 : vector<320x256xf32>
    %cst_1 = arith.constant 3.500000e+01 : f32
    %6 = vector.broadcast %cst_1 : f32 to vector<320x256xf32>
    %7 = arith.addf %6, %5 : vector<320x256xf32>
    %8 = arith.mulf %0, %7 : vector<320x256xf32>
    %cst_2 = arith.constant -2.100000e+01 : f32
    %9 = vector.broadcast %cst_2 : f32 to vector<320x256xf32>
    %10 = arith.addf %9, %8 : vector<320x256xf32>
    %11 = arith.mulf %3, %10 : vector<320x256xf32>
    %cst_3 = arith.constant 1.000000e+00 : f32
    %12 = vector.broadcast %cst_3 : f32 to vector<320x256xf32>
    %13 = arith.addf %12, %11 : vector<320x256xf32>
    %cst_4 = arith.constant 1.000000e+00 : f32
    %14 = vector.broadcast %cst_4 : f32 to vector<320x256xf32>
    %15 = arith.cmpf olt, %0, %14 : vector<320x256xf32>
    %cst_5 = arith.constant 0.000000e+00 : f32
    %16 = vector.broadcast %cst_5 : f32 to vector<320x256xf32>
    %17 = arith.select %15, %13, %16 : vector<320x256xi1>, vector<320x256xf32>
    %c0_6 = arith.constant 0 : index
    %c0_7 = arith.constant 0 : index
    %18 = vector.load %arg3[%c0_6, %c0_7] : memref<320x256xf32, #tpu.memory_space<vmem>>, vector<320x256xf32>
    tpu.vector_store %arg3[%c0_6, %c0_7], %17 {strides = array<i32>} : memref<320x256xf32, #tpu.memory_space<vmem>>, vector<320x256xf32>,
    return
  }
  func.func @transform_0(%arg0: i32, %arg1: i32) -> (i32, i32) {
    %c0_i32 = arith.constant 0 : i32
    return %arg0, %arg1 : i32, i32
  }
  func.func @transform_1(%arg0: i32, %arg1: i32) -> (i32, i32) {
    %c0_i32 = arith.constant 0 : i32
    return %arg0, %arg1 : i32, i32
  }
}

</mosaic_0001>

<bundles_post_ra>
// kernel: tpu_custom_call.1
= control target key start
LH: loop header
LB: loop body
LE: loop exit
PB: predicated region body
PF: predicated region fallthrough
CT: control target
= control target key end

     0   :  { %6 = vsyncpa [#allocation3], 0  ;;  %s2477_s0 = inlined_call_operand.hbm [shape: f32[640,256], index: 0, kind: input, shape index: {}]   ;;  %s2478_s1 = inlined_call_operand.hbm [shape: f32[640,256], index: 1, kind: output, shape index: {}]  }
   0x1   :  { %8 = vsyncpa [#allocation3 + $0x1], 0 }
   0x2   :  { %9 = vsyncpa [#allocation4], 0 }
   0x3   :  { %11 = vsyncpa [#allocation4 + $0x1], 0  ;;  %s1519_s6 = smov 0   ;;  %s1521_s7 = smov 0  }
   0x4   :  { %s1523_s8 = smov 0   ;;  %s1525_s9 = smov 0  }
   0x5   :  { %s1527_s10 = smov 0   ;;  %s1529_s11 = smov 0  }
   0x6 LB: > { %s1306_s12 = sadd.s32 4294967295, %s1503_s11   ;;  %s1307_s13 = sadd.s32 4294967294, %s1503_s11   ;;  %s1503_s11 = sphi %s1529_s11, %s17_s11   ;;  %s1499_s10 = sphi %s1527_s10, %s2487_s10   ;;  %s1495_s9 = sphi %s1525_s9, %s2486_s9   ;;  %s1491_s8 = sphi %s1523_s8, %s2485_s8   ;;  %s1487_s7 = sphi %s1521_s7, %s2484_s7   ;;  %s1483_s6 = sphi %s1519_s6, %s2483_s6  }
   0x7   : > { %s29_s14 = sadd.s32 1, %s1499_s10  ;;  %s38_s15 = sadd.s32 1, %s1491_s8 }
   0x8   : > { %p31_p0 = scmp.ge.s32.totalorder %s29_s14, 2  ;;  %p45_p1 = scmp.ne.s32.totalorder %s1491_s8, %s1487_s7 }
   0x9   : > { %p46_p2 = scmp.eq.s32.totalorder %s1503_s11, 0  ;;  %p51_p3 = scmp.ne.s32.totalorder %s1487_s7, %s1483_s6 }
   0xa   : > { %s2489_s14 = smov (%p31_p0, %s29_s14), 0  ;;  %p52_p5 = scmp.eq.s32.totalorder %s1306_s12, 0 }
   0xb   : > { %p1560_p4 = por %p46_p2, %p45_p1  ;;  %s33_s17 = ssub.s32 %s1499_s10, %s2489_s14 }
   0xc   : > { %p77_p6 = scmp.eq.s32.totalorder %s1306_s12, 1  ;;  %p36_p7 = scmp.eq.s32.totalorder %s33_s17, 0 }
   0xd   : > { %p1566_p8 = por %p52_p5, %p51_p3  ;;  %p83_p10 = scmp.eq.s32.totalorder %s1307_s13, 1 }
   0xe   : > { %p1570_p9 = por %p77_p6, %p45_p1  ;;  %p1309_p12 = scmp.ge.s32.totalorder %s1503_s11, 2 }
   0xf   : > { %s1575_s20 = scalar_select %p36_p7, %s1491_s8, %s38_s15  }
  0x10   : > { %p1577_p11 = por %p83_p10, %p51_p3  ;;  %p1337_p13 = scmp.lt.s32.totalorder %s1503_s11, 2 }
  0x11   : > { %s103_s22 = sand.u32 1, %s1491_s8   ;;  %s1321_s24 = smul.u32 640, %s1499_s10 }
  0x12   : > { %s1323_s23 = smul.u32 640, %s103_s22  ;;  %p1330_p0 = pnand %p1337_p13, %p1560_p4 }
  0x13   : > { %s115_s27 = scalar_lea.hbm %s2477_s0, %s1321_s24  ;;  %p1312_p1 = scmp.ge.s32.totalorder %s1503_s11, 1 }
  0x14   : > { %s107_s28 = scalar_lea.vmem [#allocation2], %s1323_s23  ;;  %s116_s30 = sshll.u32 %s115_s27, 4  ;;  %s117_s30 = int_to_ptr.hbm [resolvable:$true] %s116_s30 }
  0x15   : > { %s118_s29 = sshll.u32 %s107_s28, 4  ;;  %s104_s2 = scalar_lea.sflag [#allocation3], %s103_s22  ;;  %s119_s29 = int_to_ptr.vmem [resolvable:$true] %s118_s29 }
  0x16   : > { %s1505_s3 = smov 256   ;;  %s1506_s4 = smov 16  }
  0x17   : > { %1332 = dma.hbm_to_vmem [thread:$0]  (!%p1330_p0), %s117_s30, 10240, %s119_s29, %s104_s2, %s1505_s3, %s1505_s3, %s1506_s4  }
  0x18   : > { %p126_p2 = scmp.lt.s32.totalorder %s1503_s11, 3 }
  0x1a   : > { %p127_p3 = pnand %p1312_p1, %p126_p2 }
  0x1b   : > { %s1593_s5 = sand.u32 (!%p127_p3), 1, %s1487_s7  }
  0x1c   : > { %130 = sbr.rel (%p127_p3) target bundleno = 265 (0x109), region = 24  ;;  %s133_s13 = scalar_lea.sflag (!%p127_p3), [#allocation3], %s1593_s5 }
  0x1d   : > { %s1324_s12 = smul.u32 (!%p127_p3), 640, %s1593_s5 }
  0x1f   : > { %s1599_s15 = scalar_lea.vmem (!%p127_p3), [#allocation2], %s1324_s12 }
  0x21   : > { %1474 = dma.done.wait (%p1566_p8), %s133_s13, 10240  }
  0x22   : > { %1476 = vsyncadd (%p1566_p8), %s133_s13, 4294957056  ;;  %v160_v0 = vld [vmem:[%s1599_s15] sm:$0xff]  ;;  %v161_v1 = vld [vmem:[%s1599_s15 + $0x8] sm:$0xff]  ;;  %s1640_s16 = scalar_lea.vmem [#allocation5], %s1324_s12  ;;  %s1322_s17 = smul.u32 640, %s1495_s9 }
  0x23   : > { %v162_v2 = vld [vmem:[%s1599_s15 + $0x10] sm:$0xff]  ;;  %v240_v3 = vmul.f32 %v160_v0, %v160_v0  ;;  %v480_v4 = vmul.f32 -15.0, %v160_v0  ;;  %v241_v5 = vmul.f32 %v161_v1, %v161_v1  ;;  %v481_v6 = vmul.f32 -15.0, %v161_v1  ;;  %v1609_v9 = vld [vmem:[%s1599_s15 + $0x18] sm:$0xff]  ;;  %v1615_v21 = vld [vmem:[%s1599_s15 + $0x20] sm:$0xff]  ;;  %s1216_s23 = sshll.u32 %s1640_s16, 4  ;;  %s1217_s23 = int_to_ptr.vmem [resolvable:$true] %s1216_s23 }
  0x24   : > { %v242_v7 = vmul.f32 %v162_v2, %v162_v2  ;;  %v482_v8 = vmul.f32 -15.0, %v162_v2  ;;  %vm960_vm0 = vcmp.lt.f32.partialorder %v160_v0, 1.0  ;;  %v243_v16 = vmul.f32 %v1609_v9, %v1609_v9  ;;  %v1621_v32 = vld [vmem:[%s1599_s15 + $0x28] sm:$0xff]  ;;  %v1631_v49 = vld [vmem:[%s1599_s15 + $0x30] sm:$0xff]  ;;  %v1636_v53 = vld [vmem:[%s1599_s15 + $0x38] sm:$0xff]  ;;  %s1215_s22 = scalar_lea.hbm %s2478_s1, %s1322_s17  ;;  %s1201_s25 = scalar_lea.sflag [#allocation4], %s1593_s5 }
  0x25   : > { %v320_v10 = vmul.f32 %v240_v3, %v240_v3  ;;  %v560_v11 = vadd.f32 35.0, %v480_v4  ;;  %v321_v12 = vmul.f32 %v241_v5, %v241_v5  ;;  %v561_v13 = vadd.f32 35.0, %v481_v6  ;;  %v1659_v5 = vld [vmem:[%s1599_s15 + $0x40] sm:$0xff]  ;;  %s1218_s24 = sshll.u32 %s1215_s22, 4  ;;  %s1441_s30 = scalar_lea.hbm %s2478_s1, 1280  ;;  %s1219_s24 = int_to_ptr.hbm [resolvable:$true] %s1218_s24 }
  0x26   : > { %v322_v14 = vmul.f32 %v242_v7, %v242_v7  ;;  %v562_v15 = vadd.f32 35.0, %v482_v8  ;;  %v483_v20 = vmul.f32 -15.0, %v1609_v9  ;;  %v323_v25 = vmul.f32 %v243_v16, %v243_v16  ;;  %s1435_s26 = sshra.s32 %s1219_s24, 4  ;;  %s1436_s26 = int_to_ptr.hbm [resolvable:$true] %s1435_s26 }
  0x27   : > { %v400_v17 = vmul.f32 %v320_v10, %v160_v0  ;;  %v640_v18 = vmul.f32 %v560_v11, %v160_v0  ;;  %v401_v19 = vmul.f32 %v321_v12, %v161_v1  ;;  %v641_v22 = vmul.f32 %v561_v13, %v161_v1  ;;  %v1668_v13 = vld [vmem:[%s1599_s15 + $0x48] sm:$0xff]  ;;  %s1437_s27 = scalar_lea.hbm %s1436_s26, 640  ;;  %p1442_p7 = scmp.lt.s32.totalorder %s1436_s26, %s2478_s1 }
  0x28   : > { %v402_v23 = vmul.f32 %v322_v14, %v162_v2  ;;  %v642_v24 = vmul.f32 %v562_v15, %v162_v2  ;;  %vm961_vm1 = vcmp.lt.f32.partialorder %v161_v1, 1.0  ;;  %v563_v27 = vadd.f32 35.0, %v483_v20  ;;  %p1438_p4 = scmp.ne.s32.totalorder %s1436_s26, %s1437_s27  ;;  %p1443_p8 = scmp.lt.s32.totalorder %s1441_s30, %s1437_s27 }
  0x29   : > { %v720_v26 = vadd.f32 -21.0, %v640_v18  ;;  %v244_v28 = vmul.f32 %v1615_v21, %v1615_v21  ;;  %v721_v29 = vadd.f32 -21.0, %v641_v22  ;;  %vm962_vm2 = vcmp.lt.f32.partialorder %v162_v2, 1.0 }
  0x2a   : > { %v722_v30 = vadd.f32 -21.0, %v642_v24  ;;  %v484_v31 = vmul.f32 -15.0, %v1615_v21  ;;  %v403_v34 = vmul.f32 %v323_v25, %v1609_v9  ;;  %v643_v35 = vmul.f32 %v563_v27, %v1609_v9  ;;  %v1680_v25 = vld [vmem:[%s1599_s15 + $0x50] sm:$0xff]  ;;  %p1439_p5 = pnand %p1438_p4, %p1570_p9  ;;  %p1444_p10 = por %p1443_p8, %p1442_p7 }
  0x2b   : > { %v800_v33 = vmul.f32 %v720_v26, %v400_v17  ;;  %v324_v36 = vmul.f32 %v244_v28, %v244_v28  ;;  %v801_v37 = vmul.f32 %v721_v29, %v401_v19  ;;  %v245_v40 = vmul.f32 %v1621_v32, %v1621_v32 }
  0x2c   : > { %v802_v38 = vmul.f32 %v722_v30, %v402_v23  ;;  %v564_v39 = vadd.f32 35.0, %v484_v31  ;;  %v723_v42 = vadd.f32 -21.0, %v643_v35  ;;  %v485_v44 = vmul.f32 -15.0, %v1621_v32  ;;  %p1440_p6 = pneg %p1439_p5 }
  0x2d   : > { %v880_v41 = vadd.f32 1.0, %v800_v33  ;;  %v404_v43 = vmul.f32 %v324_v36, %v1615_v21  ;;  %v881_v45 = vadd.f32 1.0, %v801_v37  ;;  %v325_v48 = vmul.f32 %v245_v40, %v245_v40  ;;  %v1693_v36 = vld [vmem:[%s1599_s15 + $0x58] sm:$0xff] }
  0x2e   : > { %v882_v46 = vadd.f32 1.0, %v802_v38  ;;  %v644_v47 = vmul.f32 %v564_v39, %v1615_v21  ;;  %v803_v51 = vmul.f32 %v723_v42, %v403_v34  ;;  %vm963_vm3 = vcmp.lt.f32.partialorder %v1609_v9, 1.0  ;;  %p1445_p13 = pnand %p1444_p10, %p1440_p6 }
  0x2f   : > { %v1040_v50 = vsel %vm960_vm0, %v880_v41, 0.0  ;;  %v565_v52 = vadd.f32 35.0, %v485_v44  ;;  %v1041_v54 = vsel %vm961_vm1, %v881_v45, 0.0  ;;  %v405_v57 = vmul.f32 %v325_v48, %v1621_v32 }
  0x30   : > { %1120 = vst [vmem:[%s1640_s16] sm:$0xff] %v1040_v50  ;;  %v1042_v55 = vsel %vm962_vm2, %v882_v46, 0.0  ;;  %v724_v56 = vadd.f32 -21.0, %v644_v47  ;;  %v883_v58 = vadd.f32 1.0, %v803_v51  ;;  %v246_v60 = vmul.f32 %v1631_v49, %v1631_v49  ;;  %v1704_v50 = vld [vmem:[%s1599_s15 + $0x60] sm:$0xff] }
  0x31   : > { %1121 = vst [vmem:[%s1640_s16 + $0x8] sm:$0xff] %v1041_v54  ;;  %v645_v59 = vmul.f32 %v565_v52, %v1621_v32  ;;  %v486_v61 = vmul.f32 -15.0, %v1631_v49  ;;  %vm964_vm4 = vcmp.lt.f32.partialorder %v1615_v21, 1.0  ;;  %v247_v63 = vmul.f32 %v1636_v53, %v1636_v53 }
  0x32   : > { %1122 = vst [vmem:[%s1640_s16 + $0x10] sm:$0xff] %v1042_v55  ;;  %v804_v62 = vmul.f32 %v724_v56, %v404_v43  ;;  %v487_v0 = vmul.f32 -15.0, %v1636_v53  ;;  %v1043_v1 = vsel %vm963_vm3, %v883_v58, 0.0  ;;  %v326_v3 = vmul.f32 %v246_v60, %v246_v60 }
  0x33   : > { %v725_v2 = vadd.f32 -21.0, %v645_v59  ;;  %v566_v4 = vadd.f32 35.0, %v486_v61  ;;  %1123 = vst [vmem:[%s1640_s16 + $0x18] sm:$0xff] %v1043_v1  ;;  %vm965_vm5 = vcmp.lt.f32.partialorder %v1621_v32, 1.0  ;;  %v327_v7 = vmul.f32 %v247_v63, %v247_v63 }
  0x34   : > { %v884_v6 = vadd.f32 1.0, %v804_v62  ;;  %v567_v8 = vadd.f32 35.0, %v487_v0  ;;  %v406_v11 = vmul.f32 %v326_v3, %v1631_v49  ;;  %v248_v9 = vmul.f32 %v1659_v5, %v1659_v5 }
  0x35   : > { %v805_v10 = vmul.f32 %v725_v2, %v405_v57  ;;  %v646_v12 = vmul.f32 %v566_v4, %v1631_v49  ;;  %v407_v15 = vmul.f32 %v327_v7, %v1636_v53  ;;  %v488_v17 = vmul.f32 -15.0, %v1659_v5  ;;  %v1713_v57 = vld [vmem:[%s1599_s15 + $0x68] sm:$0xff] }
  0x36   : > { %v1044_v14 = vsel %vm964_vm4, %v884_v6, 0.0  ;;  %v647_v16 = vmul.f32 %v567_v8, %v1636_v53  ;;  %v328_v20 = vmul.f32 %v248_v9, %v248_v9  ;;  %v249_v24 = vmul.f32 %v1668_v13, %v1668_v13 }
  0x37   : > { %1124 = vst [vmem:[%s1640_s16 + $0x20] sm:$0xff] %v1044_v14  ;;  %v885_v18 = vadd.f32 1.0, %v805_v10  ;;  %v726_v19 = vadd.f32 -21.0, %v646_v12  ;;  %v568_v23 = vadd.f32 35.0, %v488_v17  ;;  %v489_v21 = vmul.f32 -15.0, %v1668_v13 }
  0x38   : > { %v727_v22 = vadd.f32 -21.0, %v647_v16  ;;  %vm966_vm6 = vcmp.lt.f32.partialorder %v1631_v49, 1.0  ;;  %v408_v28 = vmul.f32 %v328_v20, %v1659_v5  ;;  %v329_v31 = vmul.f32 %v249_v24, %v249_v24  ;;  %v1735_v16 = vld [vmem:[%s1599_s15 + $0x78] sm:$0xff] }
  0x39   : > { %v1045_v26 = vsel %vm965_vm5, %v885_v18, 0.0  ;;  %v806_v27 = vmul.f32 %v726_v19, %v406_v11  ;;  %v648_v30 = vmul.f32 %v568_v23, %v1659_v5  ;;  %v569_v33 = vadd.f32 35.0, %v489_v21 }
  0x3a   : > { %1125 = vst [vmem:[%s1640_s16 + $0x28] sm:$0xff] %v1045_v26  ;;  %v807_v29 = vmul.f32 %v727_v22, %v407_v15  ;;  %vm967_vm7 = vcmp.lt.f32.partialorder %v1636_v53, 1.0  ;;  %v250_v35 = vmul.f32 %v1680_v25, %v1680_v25  ;;  %v490_v32 = vmul.f32 -15.0, %v1680_v25 }
  0x3b   : > { %v886_v34 = vadd.f32 1.0, %v806_v27  ;;  %v728_v38 = vadd.f32 -21.0, %v648_v30  ;;  %v409_v39 = vmul.f32 %v329_v31, %v1668_v13  ;;  %v649_v40 = vmul.f32 %v569_v33, %v1668_v13 }
  0x3c   : > { %v887_v37 = vadd.f32 1.0, %v807_v29  ;;  %v330_v42 = vmul.f32 %v250_v35, %v250_v35  ;;  %v570_v43 = vadd.f32 35.0, %v490_v32  ;;  %v251_v44 = vmul.f32 %v1693_v36, %v1693_v36 }
  0x3d   : > { %v1046_v41 = vsel %vm966_vm6, %v886_v34, 0.0  ;;  %v808_v46 = vmul.f32 %v728_v38, %v408_v28  ;;  %v729_v47 = vadd.f32 -21.0, %v649_v40  ;;  %v491_v48 = vmul.f32 -15.0, %v1693_v36  ;;  %v1745_v28 = vld [vmem:[%s1599_s15 + $0x80] sm:$0xff]  ;;  %v1755_v38 = vld [vmem:[%s1599_s15 + $0x88] sm:$0xff] }
  0x3e   : > { %1126 = vst [vmem:[%s1640_s16 + $0x30] sm:$0xff] %v1046_v41  ;;  %v1047_v45 = vsel %vm967_vm7, %v887_v37, 0.0  ;;  %vm968_vm8 = vcmp.lt.f32.partialorder %v1659_v5, 1.0  ;;  %v410_v49 = vmul.f32 %v330_v42, %v1680_v25  ;;  %v650_v51 = vmul.f32 %v570_v43, %v1680_v25  ;;  %v1724_v5 = vld [vmem:[%s1599_s15 + $0x70] sm:$0xff] }
  0x3f   : > { %1127 = vst [vmem:[%s1640_s16 + $0x38] sm:$0xff] %v1047_v45  ;;  %v331_v52 = vmul.f32 %v251_v44, %v251_v44  ;;  %v888_v53 = vadd.f32 1.0, %v808_v46  ;;  %v809_v54 = vmul.f32 %v729_v47, %v409_v39  ;;  %v571_v55 = vadd.f32 35.0, %v491_v48 }
  0x40   : > { %v252_v56 = vmul.f32 %v1704_v50, %v1704_v50  ;;  %vm969_vm9 = vcmp.lt.f32.partialorder %v1668_v13, 1.0  ;;  %v730_v58 = vadd.f32 -21.0, %v650_v51  ;;  %v492_v60 = vmul.f32 -15.0, %v1704_v50 }
  0x41   : > { %v411_v59 = vmul.f32 %v331_v52, %v1693_v36  ;;  %v1048_v61 = vsel %vm968_vm8, %v888_v53, 0.0  ;;  %v889_v62 = vadd.f32 1.0, %v809_v54  ;;  %v651_v63 = vmul.f32 %v571_v55, %v1693_v36 }
  0x42   : > { %v332_v0 = vmul.f32 %v252_v56, %v252_v56  ;;  %1128 = vst [vmem:[%s1640_s16 + $0x40] sm:$0xff] %v1048_v61  ;;  %v810_v1 = vmul.f32 %v730_v58, %v410_v49  ;;  %v572_v2 = vadd.f32 35.0, %v492_v60  ;;  %v253_v3 = vmul.f32 %v1713_v57, %v1713_v57  ;;  %v1768_v49 = vld [vmem:[%s1599_s15 + $0x90] sm:$0xff]  ;;  %v1779_v60 = vld [vmem:[%s1599_s15 + $0x98] sm:$0xff] }
  0x43   : > { %v493_v4 = vmul.f32 -15.0, %v1713_v57  ;;  %v1049_v6 = vsel %vm969_vm9, %v889_v62, 0.0  ;;  %vm970_vm10 = vcmp.lt.f32.partialorder %v1680_v25, 1.0  ;;  %v731_v7 = vadd.f32 -21.0, %v651_v63 }
  0x44   : > { %v412_v8 = vmul.f32 %v332_v0, %v1704_v50  ;;  %1129 = vst [vmem:[%s1640_s16 + $0x48] sm:$0xff] %v1049_v6  ;;  %v890_v10 = vadd.f32 1.0, %v810_v1  ;;  %v652_v11 = vmul.f32 %v572_v2, %v1704_v50  ;;  %v333_v12 = vmul.f32 %v253_v3, %v253_v3 }
  0x45   : > { %v573_v9 = vadd.f32 35.0, %v493_v4  ;;  %v811_v13 = vmul.f32 %v731_v7, %v411_v59  ;;  %vm971_vm11 = vcmp.lt.f32.partialorder %v1693_v36, 1.0  ;;  %v254_v14 = vmul.f32 %v1724_v5, %v1724_v5 }
  0x46   : > { %v494_v15 = vmul.f32 -15.0, %v1724_v5  ;;  %v1050_v17 = vsel %vm970_vm10, %v890_v10, 0.0  ;;  %v732_v18 = vadd.f32 -21.0, %v652_v11  ;;  %v413_v19 = vmul.f32 %v333_v12, %v1713_v57 }
  0x47   : > { %v653_v20 = vmul.f32 %v573_v9, %v1713_v57  ;;  %1130 = vst [vmem:[%s1640_s16 + $0x50] sm:$0xff] %v1050_v17  ;;  %v891_v22 = vadd.f32 1.0, %v811_v13  ;;  %v334_v23 = vmul.f32 %v254_v14, %v254_v14  ;;  %v255_v21 = vmul.f32 %v1735_v16, %v1735_v16 }
  0x48   : > { %v574_v24 = vadd.f32 35.0, %v494_v15  ;;  %v812_v25 = vmul.f32 %v732_v18, %v412_v8  ;;  %vm972_vm12 = vcmp.lt.f32.partialorder %v1704_v50, 1.0  ;;  %v495_v27 = vmul.f32 -15.0, %v1735_v16  ;;  %v1789_v8 = vld [vmem:[%s1599_s15 + $0xa0] sm:$0xff]  ;;  %v1799_v18 = vld [vmem:[%s1599_s15 + $0xa8] sm:$0xff] }
  0x49   : > { %v733_v26 = vadd.f32 -21.0, %v653_v20  ;;  %v1051_v29 = vsel %vm971_vm11, %v891_v22, 0.0  ;;  %v414_v30 = vmul.f32 %v334_v23, %v1724_v5  ;;  %v335_v33 = vmul.f32 %v255_v21, %v255_v21 }
  0x4a   : > { %v654_v31 = vmul.f32 %v574_v24, %v1724_v5  ;;  %1131 = vst [vmem:[%s1640_s16 + $0x58] sm:$0xff] %v1051_v29  ;;  %v892_v34 = vadd.f32 1.0, %v812_v25  ;;  %v575_v32 = vadd.f32 35.0, %v495_v27  ;;  %v256_v37 = vmul.f32 %v1745_v28, %v1745_v28 }
  0x4b   : > { %v813_v35 = vmul.f32 %v733_v26, %v413_v19  ;;  %vm973_vm13 = vcmp.lt.f32.partialorder %v1713_v57, 1.0  ;;  %v415_v39 = vmul.f32 %v335_v33, %v1735_v16  ;;  %v496_v40 = vmul.f32 -15.0, %v1745_v28 }
  0x4c   : > { %v734_v36 = vadd.f32 -21.0, %v654_v31  ;;  %v1052_v41 = vsel %vm972_vm12, %v892_v34, 0.0  ;;  %v655_v43 = vmul.f32 %v575_v32, %v1735_v16  ;;  %v336_v44 = vmul.f32 %v256_v37, %v256_v37 }
  0x4d   : > { %v893_v42 = vadd.f32 1.0, %v813_v35  ;;  %1132 = vst [vmem:[%s1640_s16 + $0x60] sm:$0xff] %v1052_v41  ;;  %v576_v46 = vadd.f32 35.0, %v496_v40  ;;  %v257_v47 = vmul.f32 %v1755_v38, %v1755_v38  ;;  %v497_v48 = vmul.f32 -15.0, %v1755_v38  ;;  %v1823_v40 = vld [vmem:[%s1599_s15 + $0xb8] sm:$0xff] }
  0x4e   : > { %v814_v45 = vmul.f32 %v734_v36, %v414_v30  ;;  %vm974_vm14 = vcmp.lt.f32.partialorder %v1724_v5, 1.0  ;;  %v735_v50 = vadd.f32 -21.0, %v655_v43  ;;  %v416_v52 = vmul.f32 %v336_v44, %v1745_v28  ;;  %v1812_v30 = vld [vmem:[%s1599_s15 + $0xb0] sm:$0xff] }
  0x4f   : > { %v1053_v51 = vsel %vm973_vm13, %v893_v42, 0.0  ;;  %v656_v54 = vmul.f32 %v576_v46, %v1745_v28  ;;  %v337_v55 = vmul.f32 %v257_v47, %v257_v47  ;;  %v577_v56 = vadd.f32 35.0, %v497_v48 }
  0x50   : > { %1133 = vst [vmem:[%s1640_s16 + $0x68] sm:$0xff] %v1053_v51  ;;  %v894_v53 = vadd.f32 1.0, %v814_v45  ;;  %v815_v57 = vmul.f32 %v735_v50, %v415_v39  ;;  %vm975_vm15 = vcmp.lt.f32.partialorder %v1735_v16, 1.0  ;;  %v258_v58 = vmul.f32 %v1768_v49, %v1768_v49 }
  0x51   : > { %v498_v59 = vmul.f32 -15.0, %v1768_v49  ;;  %v736_v62 = vadd.f32 -21.0, %v656_v54  ;;  %v417_v63 = vmul.f32 %v337_v55, %v1755_v38  ;;  %v657_v0 = vmul.f32 %v577_v56, %v1755_v38 }
  0x52   : > { %v1054_v61 = vsel %vm974_vm14, %v894_v53, 0.0  ;;  %v895_v1 = vadd.f32 1.0, %v815_v57  ;;  %v338_v2 = vmul.f32 %v258_v58, %v258_v58  ;;  %v259_v4 = vmul.f32 %v1779_v60, %v1779_v60 }
  0x53   : > { %1134 = vst [vmem:[%s1640_s16 + $0x70] sm:$0xff] %v1054_v61  ;;  %v578_v3 = vadd.f32 35.0, %v498_v59  ;;  %v816_v5 = vmul.f32 %v736_v62, %v416_v52  ;;  %vm976_vm0 = vcmp.lt.f32.partialorder %v1745_v28, 1.0  ;;  %v737_v6 = vadd.f32 -21.0, %v657_v0  ;;  %v1833_v52 = vld [vmem:[%s1599_s15 + $0xc0] sm:$0xff]  ;;  %v1843_v62 = vld [vmem:[%s1599_s15 + $0xc8] sm:$0xff] }
  0x54   : > { %v499_v7 = vmul.f32 -15.0, %v1779_v60  ;;  %v1055_v10 = vsel %vm975_vm15, %v895_v1, 0.0  ;;  %v418_v11 = vmul.f32 %v338_v2, %v1768_v49  ;;  %v339_v9 = vmul.f32 %v259_v4, %v259_v4 }
  0x55   : > { %v658_v12 = vmul.f32 %v578_v3, %v1768_v49  ;;  %1135 = vst [vmem:[%s1640_s16 + $0x78] sm:$0xff] %v1055_v10  ;;  %v896_v13 = vadd.f32 1.0, %v816_v5  ;;  %v817_v14 = vmul.f32 %v737_v6, %v417_v63  ;;  %v260_v17 = vmul.f32 %v1789_v8, %v1789_v8 }
  0x56   : > { %v579_v15 = vadd.f32 35.0, %v499_v7  ;;  %vm977_vm1 = vcmp.lt.f32.partialorder %v1755_v38, 1.0  ;;  %v419_v19 = vmul.f32 %v339_v9, %v1779_v60  ;;  %v500_v20 = vmul.f32 -15.0, %v1789_v8 }
  0x57   : > { %v738_v16 = vadd.f32 -21.0, %v658_v12  ;;  %v1056_v22 = vsel %vm976_vm0, %v896_v13, 0.0  ;;  %v897_v23 = vadd.f32 1.0, %v817_v14  ;;  %v340_v21 = vmul.f32 %v260_v17, %v260_v17 }
  0x58   : > { %v659_v24 = vmul.f32 %v579_v15, %v1779_v60  ;;  %1136 = vst [vmem:[%s1640_s16 + $0x80] sm:$0xff] %v1056_v22  ;;  %v580_v26 = vadd.f32 35.0, %v500_v20  ;;  %v261_v27 = vmul.f32 %v1799_v18, %v1799_v18  ;;  %v501_v29 = vmul.f32 -15.0, %v1799_v18  ;;  %v1867_v20 = vld [vmem:[%s1599_s15 + $0xd8] sm:$0xff] }
  0x59   : > { %v818_v25 = vmul.f32 %v738_v16, %v418_v11  ;;  %v1057_v31 = vsel %vm977_vm1, %v897_v23, 0.0  ;;  %vm978_vm2 = vcmp.lt.f32.partialorder %v1768_v49, 1.0  ;;  %v420_v33 = vmul.f32 %v340_v21, %v1789_v8  ;;  %v1856_v11 = vld [vmem:[%s1599_s15 + $0xd0] sm:$0xff] }
  0x5a   : > { %v739_v28 = vadd.f32 -21.0, %v659_v24  ;;  %1137 = vst [vmem:[%s1640_s16 + $0x88] sm:$0xff] %v1057_v31  ;;  %v660_v35 = vmul.f32 %v580_v26, %v1789_v8  ;;  %v341_v32 = vmul.f32 %v261_v27, %v261_v27  ;;  %v581_v37 = vadd.f32 35.0, %v501_v29 }
  0x5b   : > { %v898_v34 = vadd.f32 1.0, %v818_v25  ;;  %vm979_vm3 = vcmp.lt.f32.partialorder %v1779_v60, 1.0  ;;  %v262_v36 = vmul.f32 %v1812_v30, %v1812_v30  ;;  %v502_v39 = vmul.f32 -15.0, %v1812_v30 }
  0x5c   : > { %v819_v38 = vmul.f32 %v739_v28, %v419_v19  ;;  %v740_v42 = vadd.f32 -21.0, %v660_v35  ;;  %v421_v43 = vmul.f32 %v341_v32, %v1799_v18  ;;  %v661_v44 = vmul.f32 %v581_v37, %v1799_v18 }
  0x5d   : > { %v1058_v41 = vsel %vm978_vm2, %v898_v34, 0.0  ;;  %v342_v46 = vmul.f32 %v262_v36, %v262_v36  ;;  %v582_v47 = vadd.f32 35.0, %v502_v39  ;;  %v263_v48 = vmul.f32 %v1823_v40, %v1823_v40 }
  0x5e   : > { %1138 = vst [vmem:[%s1640_s16 + $0x90] sm:$0xff] %v1058_v41  ;;  %v899_v45 = vadd.f32 1.0, %v819_v38  ;;  %v820_v49 = vmul.f32 %v740_v42, %v420_v33  ;;  %vm980_vm4 = vcmp.lt.f32.partialorder %v1789_v8, 1.0  ;;  %v741_v51 = vadd.f32 -21.0, %v661_v44  ;;  %v1877_v33 = vld [vmem:[%s1599_s15 + $0xe0] sm:$0xff]  ;;  %v1887_v42 = vld [vmem:[%s1599_s15 + $0xe8] sm:$0xff] }
  0x5f   : > { %v503_v50 = vmul.f32 -15.0, %v1823_v40  ;;  %v422_v54 = vmul.f32 %v342_v46, %v1812_v30  ;;  %v662_v55 = vmul.f32 %v582_v47, %v1812_v30  ;;  %v343_v56 = vmul.f32 %v263_v48, %v263_v48 }
  0x60   : > { %v1059_v53 = vsel %vm979_vm3, %v899_v45, 0.0  ;;  %v900_v57 = vadd.f32 1.0, %v820_v49  ;;  %v821_v58 = vmul.f32 %v741_v51, %v421_v43  ;;  %v264_v61 = vmul.f32 %v1833_v52, %v1833_v52 }
  0x61   : > { %1139 = vst [vmem:[%s1640_s16 + $0x98] sm:$0xff] %v1059_v53  ;;  %v583_v59 = vadd.f32 35.0, %v503_v50  ;;  %vm981_vm5 = vcmp.lt.f32.partialorder %v1799_v18, 1.0  ;;  %v742_v60 = vadd.f32 -21.0, %v662_v55  ;;  %v423_v63 = vmul.f32 %v343_v56, %v1823_v40 }
  0x62   : > { %v504_v0 = vmul.f32 -15.0, %v1833_v52  ;;  %v1060_v1 = vsel %vm980_vm4, %v900_v57, 0.0  ;;  %v901_v2 = vadd.f32 1.0, %v821_v58  ;;  %v344_v4 = vmul.f32 %v264_v61, %v264_v61 }
  0x63   : > { %v663_v3 = vmul.f32 %v583_v59, %v1823_v40  ;;  %1140 = vst [vmem:[%s1640_s16 + $0xa0] sm:$0xff] %v1060_v1  ;;  %v822_v5 = vmul.f32 %v742_v60, %v422_v54  ;;  %v265_v7 = vmul.f32 %v1843_v62, %v1843_v62  ;;  %v505_v10 = vmul.f32 -15.0, %v1843_v62  ;;  %v1900_v54 = vld [vmem:[%s1599_s15 + $0xf0] sm:$0xff] }
  0x64   : > { %v584_v6 = vadd.f32 35.0, %v504_v0  ;;  %v1061_v12 = vsel %vm981_vm5, %v901_v2, 0.0  ;;  %vm982_vm6 = vcmp.lt.f32.partialorder %v1812_v30, 1.0  ;;  %v424_v9 = vmul.f32 %v344_v4, %v1833_v52  ;;  %v1911_v0 = vld [vmem:[%s1599_s15 + $0xf8] sm:$0xff] }
  0x65   : > { %v743_v8 = vadd.f32 -21.0, %v663_v3  ;;  %1141 = vst [vmem:[%s1640_s16 + $0xa8] sm:$0xff] %v1061_v12  ;;  %v902_v13 = vadd.f32 1.0, %v822_v5  ;;  %v345_v15 = vmul.f32 %v265_v7, %v265_v7  ;;  %v585_v17 = vadd.f32 35.0, %v505_v10 }
  0x66   : > { %v664_v14 = vmul.f32 %v584_v6, %v1833_v52  ;;  %vm983_vm7 = vcmp.lt.f32.partialorder %v1823_v40, 1.0  ;;  %v266_v16 = vmul.f32 %v1856_v11, %v1856_v11  ;;  %v506_v19 = vmul.f32 -15.0, %v1856_v11 }
  0x67   : > { %v823_v18 = vmul.f32 %v743_v8, %v423_v63  ;;  %v1062_v22 = vsel %vm982_vm6, %v902_v13, 0.0  ;;  %v425_v24 = vmul.f32 %v345_v15, %v1843_v62  ;;  %v665_v21 = vmul.f32 %v585_v17, %v1843_v62 }
  0x68   : > { %v744_v23 = vadd.f32 -21.0, %v664_v14  ;;  %1142 = vst [vmem:[%s1640_s16 + $0xb0] sm:$0xff] %v1062_v22  ;;  %v346_v26 = vmul.f32 %v266_v16, %v266_v16  ;;  %v586_v27 = vadd.f32 35.0, %v506_v19  ;;  %v267_v29 = vmul.f32 %v1867_v20, %v1867_v20 }
  0x69   : > { %v903_v25 = vadd.f32 1.0, %v823_v18  ;;  %vm984_vm8 = vcmp.lt.f32.partialorder %v1833_v52, 1.0  ;;  %v745_v31 = vadd.f32 -21.0, %v665_v21  ;;  %v507_v28 = vmul.f32 -15.0, %v1867_v20 }
  0x6a   : > { %v824_v30 = vmul.f32 %v744_v23, %v424_v9  ;;  %v426_v35 = vmul.f32 %v346_v26, %v1856_v11  ;;  %v666_v32 = vmul.f32 %v586_v27, %v1856_v11  ;;  %v347_v37 = vmul.f32 %v267_v29, %v267_v29  ;;  %v1921_v9 = vld [vmem:[%s1599_s15 + $0x100] sm:$0xff]  ;;  %v1931_v23 = vld [vmem:[%s1599_s15 + $0x108] sm:$0xff] }
  0x6b   : > { %v1063_v34 = vsel %vm983_vm7, %v903_v25, 0.0  ;;  %v825_v36 = vmul.f32 %v745_v31, %v425_v24  ;;  %v587_v39 = vadd.f32 35.0, %v507_v28  ;;  %v268_v41 = vmul.f32 %v1877_v33, %v1877_v33 }
  0x6c   : > { %1143 = vst [vmem:[%s1640_s16 + $0xb8] sm:$0xff] %v1063_v34  ;;  %v904_v38 = vadd.f32 1.0, %v824_v30  ;;  %vm985_vm9 = vcmp.lt.f32.partialorder %v1843_v62, 1.0  ;;  %v746_v40 = vadd.f32 -21.0, %v666_v32  ;;  %v427_v43 = vmul.f32 %v347_v37, %v1867_v20 }
  0x6d   : > { %v508_v44 = vmul.f32 -15.0, %v1877_v33  ;;  %v905_v46 = vadd.f32 1.0, %v825_v36  ;;  %v667_v47 = vmul.f32 %v587_v39, %v1867_v20  ;;  %v348_v48 = vmul.f32 %v268_v41, %v268_v41 }
  0x6e   : > { %v1064_v45 = vsel %vm984_vm8, %v904_v38, 0.0  ;;  %v826_v49 = vmul.f32 %v746_v40, %v426_v35  ;;  %v269_v50 = vmul.f32 %v1887_v42, %v1887_v42  ;;  %v509_v53 = vmul.f32 -15.0, %v1887_v42  ;;  %v1944_v35 = vld [vmem:[%s1599_s15 + $0x110] sm:$0xff] }
  0x6f   : > { %1144 = vst [vmem:[%s1640_s16 + $0xc0] sm:$0xff] %v1064_v45  ;;  %v588_v51 = vadd.f32 35.0, %v508_v44  ;;  %v1065_v55 = vsel %vm985_vm9, %v905_v46, 0.0  ;;  %vm986_vm10 = vcmp.lt.f32.partialorder %v1856_v11, 1.0  ;;  %v747_v52 = vadd.f32 -21.0, %v667_v47  ;;  %v1955_v44 = vld [vmem:[%s1599_s15 + $0x118] sm:$0xff] }
  0x70   : > { %v428_v56 = vmul.f32 %v348_v48, %v1877_v33  ;;  %1145 = vst [vmem:[%s1640_s16 + $0xc8] sm:$0xff] %v1065_v55  ;;  %v906_v57 = vadd.f32 1.0, %v826_v49  ;;  %v349_v59 = vmul.f32 %v269_v50, %v269_v50  ;;  %v589_v61 = vadd.f32 35.0, %v509_v53 }
  0x71   : > { %v668_v58 = vmul.f32 %v588_v51, %v1877_v33  ;;  %v827_v62 = vmul.f32 %v747_v52, %v427_v43  ;;  %vm987_vm11 = vcmp.lt.f32.partialorder %v1867_v20, 1.0  ;;  %v270_v60 = vmul.f32 %v1900_v54, %v1900_v54 }
  0x72   : > { %v510_v63 = vmul.f32 -15.0, %v1900_v54  ;;  %v1066_v1 = vsel %vm986_vm10, %v906_v57, 0.0  ;;  %v429_v3 = vmul.f32 %v349_v59, %v1887_v42  ;;  %v669_v4 = vmul.f32 %v589_v61, %v1887_v42 }
  0x73   : > { %v748_v2 = vadd.f32 -21.0, %v668_v58  ;;  %1146 = vst [vmem:[%s1640_s16 + $0xd0] sm:$0xff] %v1066_v1  ;;  %v907_v5 = vadd.f32 1.0, %v827_v62  ;;  %v350_v6 = vmul.f32 %v270_v60, %v270_v60  ;;  %v271_v10 = vmul.f32 %v1911_v0, %v1911_v0 }
  0x74   : > { %v590_v7 = vadd.f32 35.0, %v510_v63  ;;  %vm988_vm12 = vcmp.lt.f32.partialorder %v1877_v33, 1.0  ;;  %v749_v12 = vadd.f32 -21.0, %v669_v4  ;;  %v511_v8 = vmul.f32 -15.0, %v1911_v0 }
  0x75   : > { %v828_v11 = vmul.f32 %v748_v2, %v428_v56  ;;  %v1067_v13 = vsel %vm987_vm11, %v907_v5, 0.0  ;;  %v430_v14 = vmul.f32 %v350_v6, %v1900_v54  ;;  %v351_v17 = vmul.f32 %v271_v10, %v271_v10  ;;  %v1965_v56 = vld [vmem:[%s1599_s15 + $0x120] sm:$0xff]  ;;  %v1975_v2 = vld [vmem:[%s1599_s15 + $0x128] sm:$0xff] }
  0x76   : > { %v670_v15 = vmul.f32 %v590_v7, %v1900_v54  ;;  %1147 = vst [vmem:[%s1640_s16 + $0xd8] sm:$0xff] %v1067_v13  ;;  %v829_v16 = vmul.f32 %v749_v12, %v429_v3  ;;  %v591_v19 = vadd.f32 35.0, %v511_v8  ;;  %v272_v22 = vmul.f32 %v1921_v9, %v1921_v9 }
  0x77   : > { %v908_v18 = vadd.f32 1.0, %v828_v11  ;;  %vm989_vm13 = vcmp.lt.f32.partialorder %v1887_v42, 1.0  ;;  %v431_v24 = vmul.f32 %v351_v17, %v1911_v0  ;;  %v512_v21 = vmul.f32 -15.0, %v1921_v9 }
  0x78   : > { %v750_v20 = vadd.f32 -21.0, %v670_v15  ;;  %v909_v26 = vadd.f32 1.0, %v829_v16  ;;  %v671_v27 = vmul.f32 %v591_v19, %v1911_v0  ;;  %v352_v29 = vmul.f32 %v272_v22, %v272_v22 }
  0x79   : > { %v1068_v25 = vsel %vm988_vm12, %v908_v18, 0.0  ;;  %v592_v31 = vadd.f32 35.0, %v512_v21  ;;  %v273_v28 = vmul.f32 %v1931_v23, %v1931_v23  ;;  %v513_v34 = vmul.f32 -15.0, %v1931_v23  ;;  %v1999_v21 = vld [vmem:[%s1599_s15 + $0x138] sm:$0xff] }
  0x7a   : > { %1148 = vst [vmem:[%s1640_s16 + $0xe0] sm:$0xff] %v1068_v25  ;;  %v830_v30 = vmul.f32 %v750_v20, %v430_v14  ;;  %v1069_v32 = vsel %vm989_vm13, %v909_v26, 0.0  ;;  %vm990_vm14 = vcmp.lt.f32.partialorder %v1900_v54, 1.0  ;;  %v751_v33 = vadd.f32 -21.0, %v671_v27  ;;  %v1988_v14 = vld [vmem:[%s1599_s15 + $0x130] sm:$0xff] }
  0x7b   : > { %v432_v37 = vmul.f32 %v352_v29, %v1921_v9  ;;  %1149 = vst [vmem:[%s1640_s16 + $0xe8] sm:$0xff] %v1069_v32  ;;  %v672_v36 = vmul.f32 %v592_v31, %v1921_v9  ;;  %v353_v39 = vmul.f32 %v273_v28, %v273_v28  ;;  %v593_v41 = vadd.f32 35.0, %v513_v34 }
  0x7c   : > { %v910_v38 = vadd.f32 1.0, %v830_v30  ;;  %v831_v42 = vmul.f32 %v751_v33, %v431_v24  ;;  %vm991_vm15 = vcmp.lt.f32.partialorder %v1911_v0, 1.0  ;;  %v274_v40 = vmul.f32 %v1944_v35, %v1944_v35 }
  0x7d   : > { %v514_v43 = vmul.f32 -15.0, %v1944_v35  ;;  %v752_v46 = vadd.f32 -21.0, %v672_v36  ;;  %v433_v47 = vmul.f32 %v353_v39, %v1931_v23  ;;  %v673_v48 = vmul.f32 %v593_v41, %v1931_v23 }
  0x7e   : > { %v1070_v45 = vsel %vm990_vm14, %v910_v38, 0.0  ;;  %v911_v49 = vadd.f32 1.0, %v831_v42  ;;  %v354_v51 = vmul.f32 %v274_v40, %v274_v40  ;;  %v275_v53 = vmul.f32 %v1955_v44, %v1955_v44 }
  0x7f   : > { %1150 = vst [vmem:[%s1640_s16 + $0xf0] sm:$0xff] %v1070_v45  ;;  %v594_v50 = vadd.f32 35.0, %v514_v43  ;;  %v832_v54 = vmul.f32 %v752_v46, %v432_v37  ;;  %vm992_vm0 = vcmp.lt.f32.partialorder %v1921_v9, 1.0  ;;  %v753_v55 = vadd.f32 -21.0, %v673_v48  ;;  %v2009_v37 = vld [vmem:[%s1599_s15 + $0x140] sm:$0xff]  ;;  %v2019_v46 = vld [vmem:[%s1599_s15 + $0x148] sm:$0xff] }
  0x80   : > { %v515_v52 = vmul.f32 -15.0, %v1955_v44  ;;  %v1071_v57 = vsel %vm991_vm15, %v911_v49, 0.0  ;;  %v434_v58 = vmul.f32 %v354_v51, %v1944_v35  ;;  %v355_v61 = vmul.f32 %v275_v53, %v275_v53 }
  0x81   : > { %v674_v59 = vmul.f32 %v594_v50, %v1944_v35  ;;  %1151 = vst [vmem:[%s1640_s16 + $0xf8] sm:$0xff] %v1071_v57  ;;  %v912_v62 = vadd.f32 1.0, %v832_v54  ;;  %v833_v60 = vmul.f32 %v753_v55, %v433_v47  ;;  %v276_v1 = vmul.f32 %v1965_v56, %v1965_v56 }
  0x82   : > { %v595_v63 = vadd.f32 35.0, %v515_v52  ;;  %vm993_vm1 = vcmp.lt.f32.partialorder %v1931_v23, 1.0  ;;  %v435_v3 = vmul.f32 %v355_v61, %v1955_v44  ;;  %v516_v4 = vmul.f32 -15.0, %v1965_v56 }
  0x83   : > { %v754_v0 = vadd.f32 -21.0, %v674_v59  ;;  %v1072_v5 = vsel %vm992_vm0, %v912_v62, 0.0  ;;  %v913_v6 = vadd.f32 1.0, %v833_v60  ;;  %v356_v10 = vmul.f32 %v276_v1, %v276_v1 }
  0x84   : > { %v675_v7 = vmul.f32 %v595_v63, %v1955_v44  ;;  %1152 = vst [vmem:[%s1640_s16 + $0x100] sm:$0xff] %v1072_v5  ;;  %v596_v12 = vadd.f32 35.0, %v516_v4  ;;  %v277_v8 = vmul.f32 %v1975_v2, %v1975_v2  ;;  %v517_v13 = vmul.f32 -15.0, %v1975_v2  ;;  %v2043_v4 = vld [vmem:[%s1599_s15 + $0x158] sm:$0xff] }
  0x85   : > { %v834_v11 = vmul.f32 %v754_v0, %v434_v58  ;;  %v1073_v15 = vsel %vm993_vm1, %v913_v6, 0.0  ;;  %vm994_vm2 = vcmp.lt.f32.partialorder %v1944_v35, 1.0  ;;  %v436_v17 = vmul.f32 %v356_v10, %v1965_v56  ;;  %v2032_v58 = vld [vmem:[%s1599_s15 + $0x150] sm:$0xff] }
  0x86   : > { %v755_v9 = vadd.f32 -21.0, %v675_v7  ;;  %1153 = vst [vmem:[%s1640_s16 + $0x108] sm:$0xff] %v1073_v15  ;;  %v676_v16 = vmul.f32 %v596_v12, %v1965_v56  ;;  %v357_v19 = vmul.f32 %v277_v8, %v277_v8  ;;  %v597_v22 = vadd.f32 35.0, %v517_v13 }
  0x87   : > { %v914_v18 = vadd.f32 1.0, %v834_v11  ;;  %vm995_vm3 = vcmp.lt.f32.partialorder %v1955_v44, 1.0  ;;  %v278_v20 = vmul.f32 %v1988_v14, %v1988_v14  ;;  %v518_v24 = vmul.f32 -15.0, %v1988_v14 }
  0x88   : > { %v835_v23 = vmul.f32 %v755_v9, %v435_v3  ;;  %v756_v26 = vadd.f32 -21.0, %v676_v16  ;;  %v437_v27 = vmul.f32 %v357_v19, %v1975_v2  ;;  %v677_v29 = vmul.f32 %v597_v22, %v1975_v2 }
  0x89   : > { %v1074_v25 = vsel %vm994_vm2, %v914_v18, 0.0  ;;  %v358_v31 = vmul.f32 %v278_v20, %v278_v20  ;;  %v598_v28 = vadd.f32 35.0, %v518_v24  ;;  %v279_v34 = vmul.f32 %v1999_v21, %v1999_v21 }
  0x8a   : > { %1154 = vst [vmem:[%s1640_s16 + $0x110] sm:$0xff] %v1074_v25  ;;  %v915_v30 = vadd.f32 1.0, %v835_v23  ;;  %v836_v35 = vmul.f32 %v756_v26, %v436_v17  ;;  %vm996_vm4 = vcmp.lt.f32.partialorder %v1965_v56, 1.0  ;;  %v757_v32 = vadd.f32 -21.0, %v677_v29  ;;  %v2053_v17 = vld [vmem:[%s1599_s15 + $0x160] sm:$0xff]  ;;  %v2063_v26 = vld [vmem:[%s1599_s15 + $0x168] sm:$0xff] }
  0x8b   : > { %v519_v33 = vmul.f32 -15.0, %v1999_v21  ;;  %v438_v36 = vmul.f32 %v358_v31, %v1988_v14  ;;  %v678_v39 = vmul.f32 %v598_v28, %v1988_v14  ;;  %v359_v41 = vmul.f32 %v279_v34, %v279_v34 }
  0x8c   : > { %v1075_v38 = vsel %vm995_vm3, %v915_v30, 0.0  ;;  %v916_v42 = vadd.f32 1.0, %v836_v35  ;;  %v837_v40 = vmul.f32 %v757_v32, %v437_v27  ;;  %v280_v45 = vmul.f32 %v2009_v37, %v2009_v37 }
  0x8d   : > { %1155 = vst [vmem:[%s1640_s16 + $0x118] sm:$0xff] %v1075_v38  ;;  %v599_v43 = vadd.f32 35.0, %v519_v33  ;;  %vm997_vm5 = vcmp.lt.f32.partialorder %v1975_v2, 1.0  ;;  %v758_v44 = vadd.f32 -21.0, %v678_v39  ;;  %v439_v47 = vmul.f32 %v359_v41, %v1999_v21 }
  0x8e   : > { %v520_v48 = vmul.f32 -15.0, %v2009_v37  ;;  %v1076_v49 = vsel %vm996_vm4, %v916_v42, 0.0  ;;  %v917_v51 = vadd.f32 1.0, %v837_v40  ;;  %v360_v53 = vmul.f32 %v280_v45, %v280_v45 }
  0x8f   : > { %v679_v50 = vmul.f32 %v599_v43, %v1999_v21  ;;  %1156 = vst [vmem:[%s1640_s16 + $0x120] sm:$0xff] %v1076_v49  ;;  %v838_v54 = vmul.f32 %v758_v44, %v438_v36  ;;  %v281_v52 = vmul.f32 %v2019_v46, %v2019_v46  ;;  %v521_v57 = vmul.f32 -15.0, %v2019_v46  ;;  %v2076_v36 = vld [vmem:[%s1599_s15 + $0x170] sm:$0xff] }
  0x90   : > { %v600_v55 = vadd.f32 35.0, %v520_v48  ;;  %v1077_v59 = vsel %vm997_vm5, %v917_v51, 0.0  ;;  %vm998_vm6 = vcmp.lt.f32.partialorder %v1988_v14, 1.0  ;;  %v440_v61 = vmul.f32 %v360_v53, %v2009_v37  ;;  %v2087_v48 = vld [vmem:[%s1599_s15 + $0x178] sm:$0xff] }
  0x91   : > { %v759_v56 = vadd.f32 -21.0, %v679_v50  ;;  %1157 = vst [vmem:[%s1640_s16 + $0x128] sm:$0xff] %v1077_v59  ;;  %v918_v62 = vadd.f32 1.0, %v838_v54  ;;  %v361_v63 = vmul.f32 %v281_v52, %v281_v52  ;;  %v601_v1 = vadd.f32 35.0, %v521_v57 }
  0x92   : > { %v680_v60 = vmul.f32 %v600_v55, %v2009_v37  ;;  %vm999_vm7 = vcmp.lt.f32.partialorder %v1999_v21, 1.0  ;;  %v282_v0 = vmul.f32 %v2032_v58, %v2032_v58  ;;  %v522_v3 = vmul.f32 -15.0, %v2032_v58 }
  0x93   : > { %v839_v2 = vmul.f32 %v759_v56, %v439_v47  ;;  %v1078_v5 = vsel %vm998_vm6, %v918_v62, 0.0  ;;  %v441_v7 = vmul.f32 %v361_v63, %v2019_v46  ;;  %v681_v10 = vmul.f32 %v601_v1, %v2019_v46 }
  0x94   : > { %v760_v6 = vadd.f32 -21.0, %v680_v60  ;;  %1158 = vst [vmem:[%s1640_s16 + $0x130] sm:$0xff] %v1078_v5  ;;  %v362_v12 = vmul.f32 %v282_v0, %v282_v0  ;;  %v602_v8 = vadd.f32 35.0, %v522_v3  ;;  %v283_v13 = vmul.f32 %v2043_v4, %v2043_v4 }
  0x95   : > { %v919_v11 = vadd.f32 1.0, %v839_v2  ;;  %vm1000_vm8 = vcmp.lt.f32.partialorder %v2009_v37, 1.0  ;;  %v761_v15 = vadd.f32 -21.0, %v681_v10  ;;  %v523_v9 = vmul.f32 -15.0, %v2043_v4 }
  0x96   : > { %v840_v14 = vmul.f32 %v760_v6, %v440_v61  ;;  %v442_v16 = vmul.f32 %v362_v12, %v2032_v58  ;;  %v682_v19 = vmul.f32 %v602_v8, %v2032_v58  ;;  %v363_v22 = vmul.f32 %v283_v13, %v283_v13  ;;  %v2097_v61 = vld [vmem:[%s1599_s15 + $0x180] sm:$0xff]  ;;  %v2107_v6 = vld [vmem:[%s1599_s15 + $0x188] sm:$0xff] }
  0x97   : > { %v1079_v18 = vsel %vm999_vm7, %v919_v11, 0.0  ;;  %v841_v20 = vmul.f32 %v761_v15, %v441_v7  ;;  %v603_v24 = vadd.f32 35.0, %v523_v9  ;;  %v284_v25 = vmul.f32 %v2053_v17, %v2053_v17 }
  0x98   : > { %1159 = vst [vmem:[%s1640_s16 + $0x138] sm:$0xff] %v1079_v18  ;;  %v920_v23 = vadd.f32 1.0, %v840_v14  ;;  %vm1001_vm9 = vcmp.lt.f32.partialorder %v2019_v46, 1.0  ;;  %v762_v21 = vadd.f32 -21.0, %v682_v19  ;;  %v443_v27 = vmul.f32 %v363_v22, %v2043_v4 }
  0x99   : > { %v524_v29 = vmul.f32 -15.0, %v2053_v17  ;;  %v921_v31 = vadd.f32 1.0, %v841_v20  ;;  %v683_v28 = vmul.f32 %v603_v24, %v2043_v4  ;;  %v364_v34 = vmul.f32 %v284_v25, %v284_v25 }
  0x9a   : > { %v1080_v30 = vsel %vm1000_vm8, %v920_v23, 0.0  ;;  %v842_v35 = vmul.f32 %v762_v21, %v442_v16  ;;  %v285_v33 = vmul.f32 %v2063_v26, %v2063_v26  ;;  %v525_v38 = vmul.f32 -15.0, %v2063_v26  ;;  %v2120_v16 = vld [vmem:[%s1599_s15 + $0x190] sm:$0xff] }
  0x9b   : > { %1160 = vst [vmem:[%s1640_s16 + $0x140] sm:$0xff] %v1080_v30  ;;  %v604_v32 = vadd.f32 35.0, %v524_v29  ;;  %v1081_v39 = vsel %vm1001_vm9, %v921_v31, 0.0  ;;  %vm1002_vm10 = vcmp.lt.f32.partialorder %v2032_v58, 1.0  ;;  %v763_v37 = vadd.f32 -21.0, %v683_v28  ;;  %v2131_v29 = vld [vmem:[%s1599_s15 + $0x198] sm:$0xff] }
  0x9c   : > { %v444_v41 = vmul.f32 %v364_v34, %v2053_v17  ;;  %1161 = vst [vmem:[%s1640_s16 + $0x148] sm:$0xff] %v1081_v39  ;;  %v922_v42 = vadd.f32 1.0, %v842_v35  ;;  %v365_v43 = vmul.f32 %v285_v33, %v285_v33  ;;  %v605_v45 = vadd.f32 35.0, %v525_v38 }
  0x9d   : > { %v684_v40 = vmul.f32 %v604_v32, %v2053_v17  ;;  %v843_v46 = vmul.f32 %v763_v37, %v443_v27  ;;  %vm1003_vm11 = vcmp.lt.f32.partialorder %v2043_v4, 1.0  ;;  %v286_v44 = vmul.f32 %v2076_v36, %v2076_v36 }
  0x9e   : > { %v526_v47 = vmul.f32 -15.0, %v2076_v36  ;;  %v1082_v49 = vsel %vm1002_vm10, %v922_v42, 0.0  ;;  %v445_v50 = vmul.f32 %v365_v43, %v2063_v26  ;;  %v685_v53 = vmul.f32 %v605_v45, %v2063_v26 }
  0x9f   : > { %v764_v51 = vadd.f32 -21.0, %v684_v40  ;;  %1162 = vst [vmem:[%s1640_s16 + $0x150] sm:$0xff] %v1082_v49  ;;  %v923_v54 = vadd.f32 1.0, %v843_v46  ;;  %v366_v55 = vmul.f32 %v286_v44, %v286_v44  ;;  %v287_v57 = vmul.f32 %v2087_v48, %v2087_v48 }
  0xa0   : > { %v606_v52 = vadd.f32 35.0, %v526_v47  ;;  %vm1004_vm12 = vcmp.lt.f32.partialorder %v2053_v17, 1.0  ;;  %v765_v59 = vadd.f32 -21.0, %v685_v53  ;;  %v527_v56 = vmul.f32 -15.0, %v2087_v48 }
  0xa1   : > { %v844_v58 = vmul.f32 %v764_v51, %v444_v41  ;;  %v1083_v62 = vsel %vm1003_vm11, %v923_v54, 0.0  ;;  %v446_v60 = vmul.f32 %v366_v55, %v2076_v36  ;;  %v367_v1 = vmul.f32 %v287_v57, %v287_v57  ;;  %v2141_v41 = vld [vmem:[%s1599_s15 + $0x1a0] sm:$0xff]  ;;  %v2151_v51 = vld [vmem:[%s1599_s15 + $0x1a8] sm:$0xff] }
  0xa2   : > { %v686_v63 = vmul.f32 %v606_v52, %v2076_v36  ;;  %1163 = vst [vmem:[%s1640_s16 + $0x158] sm:$0xff] %v1083_v62  ;;  %v845_v0 = vmul.f32 %v765_v59, %v445_v50  ;;  %v607_v3 = vadd.f32 35.0, %v527_v56  ;;  %v288_v5 = vmul.f32 %v2097_v61, %v2097_v61 }
  0xa3   : > { %v924_v2 = vadd.f32 1.0, %v844_v58  ;;  %vm1005_vm13 = vcmp.lt.f32.partialorder %v2063_v26, 1.0  ;;  %v447_v7 = vmul.f32 %v367_v1, %v2087_v48  ;;  %v528_v10 = vmul.f32 -15.0, %v2097_v61 }
  0xa4   : > { %v766_v4 = vadd.f32 -21.0, %v686_v63  ;;  %v925_v12 = vadd.f32 1.0, %v845_v0  ;;  %v687_v8 = vmul.f32 %v607_v3, %v2087_v48  ;;  %v368_v13 = vmul.f32 %v288_v5, %v288_v5 }
  0xa5   : > { %v1084_v11 = vsel %vm1004_vm12, %v924_v2, 0.0  ;;  %v608_v15 = vadd.f32 35.0, %v528_v10  ;;  %v289_v9 = vmul.f32 %v2107_v6, %v2107_v6  ;;  %v529_v18 = vmul.f32 -15.0, %v2107_v6  ;;  %v2175_v10 = vld [vmem:[%s1599_s15 + $0x1b8] sm:$0xff] }
  0xa6   : > { %1164 = vst [vmem:[%s1640_s16 + $0x160] sm:$0xff] %v1084_v11  ;;  %v846_v14 = vmul.f32 %v766_v4, %v446_v60  ;;  %v1085_v19 = vsel %vm1005_vm13, %v925_v12, 0.0  ;;  %vm1006_vm14 = vcmp.lt.f32.partialorder %v2076_v36, 1.0  ;;  %v767_v17 = vadd.f32 -21.0, %v687_v8  ;;  %v2164_v60 = vld [vmem:[%s1599_s15 + $0x1b0] sm:$0xff] }
  0xa7   : > { %v448_v22 = vmul.f32 %v368_v13, %v2097_v61  ;;  %1165 = vst [vmem:[%s1640_s16 + $0x168] sm:$0xff] %v1085_v19  ;;  %v688_v20 = vmul.f32 %v608_v15, %v2097_v61  ;;  %v369_v24 = vmul.f32 %v289_v9, %v289_v9  ;;  %v609_v25 = vadd.f32 35.0, %v529_v18 }
  0xa8   : > { %v926_v23 = vadd.f32 1.0, %v846_v14  ;;  %v847_v26 = vmul.f32 %v767_v17, %v447_v7  ;;  %vm1007_vm15 = vcmp.lt.f32.partialorder %v2087_v48, 1.0  ;;  %v290_v21 = vmul.f32 %v2120_v16, %v2120_v16 }
  0xa9   : > { %v530_v27 = vmul.f32 -15.0, %v2120_v16  ;;  %v768_v31 = vadd.f32 -21.0, %v688_v20  ;;  %v449_v28 = vmul.f32 %v369_v24, %v2107_v6  ;;  %v689_v34 = vmul.f32 %v609_v25, %v2107_v6 }
  0xaa   : > { %v1086_v30 = vsel %vm1006_vm14, %v926_v23, 0.0  ;;  %v927_v35 = vadd.f32 1.0, %v847_v26  ;;  %v370_v32 = vmul.f32 %v290_v21, %v290_v21  ;;  %v291_v38 = vmul.f32 %v2131_v29, %v2131_v29 }
  0xab   : > { %1166 = vst [vmem:[%s1640_s16 + $0x170] sm:$0xff] %v1086_v30  ;;  %v610_v33 = vadd.f32 35.0, %v530_v27  ;;  %v848_v36 = vmul.f32 %v768_v31, %v448_v22  ;;  %vm1008_vm0 = vcmp.lt.f32.partialorder %v2097_v61, 1.0  ;;  %v769_v39 = vadd.f32 -21.0, %v689_v34  ;;  %v2185_v22 = vld [vmem:[%s1599_s15 + $0x1c0] sm:$0xff]  ;;  %v2195_v31 = vld [vmem:[%s1599_s15 + $0x1c8] sm:$0xff] }
  0xac   : > { %v531_v37 = vmul.f32 -15.0, %v2131_v29  ;;  %v1087_v42 = vsel %vm1007_vm15, %v927_v35, 0.0  ;;  %v450_v40 = vmul.f32 %v370_v32, %v2120_v16  ;;  %v371_v45 = vmul.f32 %v291_v38, %v291_v38 }
  0xad   : > { %v690_v43 = vmul.f32 %v610_v33, %v2120_v16  ;;  %1167 = vst [vmem:[%s1640_s16 + $0x178] sm:$0xff] %v1087_v42  ;;  %v928_v46 = vadd.f32 1.0, %v848_v36  ;;  %v849_v44 = vmul.f32 %v769_v39, %v449_v28  ;;  %v292_v49 = vmul.f32 %v2141_v41, %v2141_v41 }
  0xae   : > { %v611_v47 = vadd.f32 35.0, %v531_v37  ;;  %vm1009_vm1 = vcmp.lt.f32.partialorder %v2107_v6, 1.0  ;;  %v451_v50 = vmul.f32 %v371_v45, %v2131_v29  ;;  %v532_v53 = vmul.f32 -15.0, %v2141_v41 }
  0xaf   : > { %v770_v48 = vadd.f32 -21.0, %v690_v43  ;;  %v1088_v54 = vsel %vm1008_vm0, %v928_v46, 0.0  ;;  %v929_v55 = vadd.f32 1.0, %v849_v44  ;;  %v372_v57 = vmul.f32 %v292_v49, %v292_v49 }
  0xb0   : > { %v691_v52 = vmul.f32 %v611_v47, %v2131_v29  ;;  %1168 = vst [vmem:[%s1640_s16 + $0x180] sm:$0xff] %v1088_v54  ;;  %v612_v59 = vadd.f32 35.0, %v532_v53  ;;  %v293_v56 = vmul.f32 %v2151_v51, %v2151_v51  ;;  %v533_v62 = vmul.f32 -15.0, %v2151_v51  ;;  %v2219_v53 = vld [vmem:[%s1599_s15 + $0x1d8] sm:$0xff] }
  0xb1   : > { %v850_v58 = vmul.f32 %v770_v48, %v450_v40  ;;  %v1089_v63 = vsel %vm1009_vm1, %v929_v55, 0.0  ;;  %vm1010_vm2 = vcmp.lt.f32.partialorder %v2120_v16, 1.0  ;;  %v452_v1 = vmul.f32 %v372_v57, %v2141_v41  ;;  %v2208_v40 = vld [vmem:[%s1599_s15 + $0x1d0] sm:$0xff] }
  0xb2   : > { %v771_v61 = vadd.f32 -21.0, %v691_v52  ;;  %1169 = vst [vmem:[%s1640_s16 + $0x188] sm:$0xff] %v1089_v63  ;;  %v692_v0 = vmul.f32 %v612_v59, %v2141_v41  ;;  %v373_v3 = vmul.f32 %v293_v56, %v293_v56  ;;  %v613_v5 = vadd.f32 35.0, %v533_v62 }
  0xb3   : > { %v930_v2 = vadd.f32 1.0, %v850_v58  ;;  %vm1011_vm3 = vcmp.lt.f32.partialorder %v2131_v29, 1.0  ;;  %v294_v4 = vmul.f32 %v2164_v60, %v2164_v60  ;;  %v534_v7 = vmul.f32 -15.0, %v2164_v60 }
  0xb4   : > { %v851_v6 = vmul.f32 %v771_v61, %v451_v50  ;;  %v772_v12 = vadd.f32 -21.0, %v692_v0  ;;  %v453_v8 = vmul.f32 %v373_v3, %v2151_v51  ;;  %v693_v13 = vmul.f32 %v613_v5, %v2151_v51 }
  0xb5   : > { %v1090_v11 = vsel %vm1010_vm2, %v930_v2, 0.0  ;;  %v374_v15 = vmul.f32 %v294_v4, %v294_v4  ;;  %v614_v9 = vadd.f32 35.0, %v534_v7  ;;  %v295_v18 = vmul.f32 %v2175_v10, %v2175_v10 }
  0xb6   : > { %1170 = vst [vmem:[%s1640_s16 + $0x190] sm:$0xff] %v1090_v11  ;;  %v931_v14 = vadd.f32 1.0, %v851_v6  ;;  %v852_v16 = vmul.f32 %v772_v12, %v452_v1  ;;  %vm1012_vm4 = vcmp.lt.f32.partialorder %v2141_v41, 1.0  ;;  %v773_v19 = vadd.f32 -21.0, %v693_v13  ;;  %v2229_v1 = vld [vmem:[%s1599_s15 + $0x1e0] sm:$0xff]  ;;  %v2239_v12 = vld [vmem:[%s1599_s15 + $0x1e8] sm:$0xff] }
  0xb7   : > { %v535_v17 = vmul.f32 -15.0, %v2175_v10  ;;  %v454_v20 = vmul.f32 %v374_v15, %v2164_v60  ;;  %v694_v24 = vmul.f32 %v614_v9, %v2164_v60  ;;  %v375_v25 = vmul.f32 %v295_v18, %v295_v18 }
  0xb8   : > { %v1091_v23 = vsel %vm1011_vm3, %v931_v14, 0.0  ;;  %v932_v26 = vadd.f32 1.0, %v852_v16  ;;  %v853_v21 = vmul.f32 %v773_v19, %v453_v8  ;;  %v296_v30 = vmul.f32 %v2185_v22, %v2185_v22 }
  0xb9   : > { %1171 = vst [vmem:[%s1640_s16 + $0x198] sm:$0xff] %v1091_v23  ;;  %v615_v27 = vadd.f32 35.0, %v535_v17  ;;  %vm1013_vm5 = vcmp.lt.f32.partialorder %v2151_v51, 1.0  ;;  %v774_v29 = vadd.f32 -21.0, %v694_v24  ;;  %v455_v28 = vmul.f32 %v375_v25, %v2175_v10 }
  0xba   : > { %v536_v34 = vmul.f32 -15.0, %v2185_v22  ;;  %v1092_v35 = vsel %vm1012_vm4, %v932_v26, 0.0  ;;  %v933_v32 = vadd.f32 1.0, %v853_v21  ;;  %v376_v38 = vmul.f32 %v296_v30, %v296_v30 }
  0xbb   : > { %v695_v33 = vmul.f32 %v615_v27, %v2175_v10  ;;  %1172 = vst [vmem:[%s1640_s16 + $0x1a0] sm:$0xff] %v1092_v35  ;;  %v854_v36 = vmul.f32 %v774_v29, %v454_v20  ;;  %v297_v37 = vmul.f32 %v2195_v31, %v2195_v31  ;;  %v537_v42 = vmul.f32 -15.0, %v2195_v31  ;;  %v2252_v20 = vld [vmem:[%s1599_s15 + $0x1f0] sm:$0xff] }
  0xbc   : > { %v616_v39 = vadd.f32 35.0, %v536_v34  ;;  %v1093_v43 = vsel %vm1013_vm5, %v933_v32, 0.0  ;;  %vm1014_vm6 = vcmp.lt.f32.partialorder %v2164_v60, 1.0  ;;  %v456_v45 = vmul.f32 %v376_v38, %v2185_v22  ;;  %v2263_v34 = vld [vmem:[%s1599_s15 + $0x1f8] sm:$0xff] }
  0xbd   : > { %v775_v41 = vadd.f32 -21.0, %v695_v33  ;;  %1173 = vst [vmem:[%s1640_s16 + $0x1a8] sm:$0xff] %v1093_v43  ;;  %v934_v46 = vadd.f32 1.0, %v854_v36  ;;  %v377_v47 = vmul.f32 %v297_v37, %v297_v37  ;;  %v617_v49 = vadd.f32 35.0, %v537_v42 }
  0xbe   : > { %v696_v44 = vmul.f32 %v616_v39, %v2185_v22  ;;  %vm1015_vm7 = vcmp.lt.f32.partialorder %v2175_v10, 1.0  ;;  %v298_v48 = vmul.f32 %v2208_v40, %v2208_v40  ;;  %v538_v50 = vmul.f32 -15.0, %v2208_v40 }
  0xbf   : > { %v855_v51 = vmul.f32 %v775_v41, %v455_v28  ;;  %v1094_v54 = vsel %vm1014_vm6, %v934_v46, 0.0  ;;  %v457_v52 = vmul.f32 %v377_v47, %v2195_v31  ;;  %v697_v57 = vmul.f32 %v617_v49, %v2195_v31 }
  0xc0   : > { %v776_v55 = vadd.f32 -21.0, %v696_v44  ;;  %1174 = vst [vmem:[%s1640_s16 + $0x1b0] sm:$0xff] %v1094_v54  ;;  %v378_v59 = vmul.f32 %v298_v48, %v298_v48  ;;  %v618_v56 = vadd.f32 35.0, %v538_v50  ;;  %v299_v62 = vmul.f32 %v2219_v53, %v2219_v53 }
  0xc1   : > { %v935_v58 = vadd.f32 1.0, %v855_v51  ;;  %vm1016_vm8 = vcmp.lt.f32.partialorder %v2185_v22, 1.0  ;;  %v777_v63 = vadd.f32 -21.0, %v697_v57  ;;  %v539_v61 = vmul.f32 -15.0, %v2219_v53 }
  0xc2   : > { %v856_v60 = vmul.f32 %v776_v55, %v456_v45  ;;  %v458_v0 = vmul.f32 %v378_v59, %v2208_v40  ;;  %v698_v3 = vmul.f32 %v618_v56, %v2208_v40  ;;  %v379_v5 = vmul.f32 %v299_v62, %v299_v62  ;;  %v2273_v45 = vld [vmem:[%s1599_s15 + $0x200] sm:$0xff]  ;;  %v2283_v55 = vld [vmem:[%s1599_s15 + $0x208] sm:$0xff] }
  0xc3   : > { %v1095_v2 = vsel %vm1015_vm7, %v935_v58, 0.0  ;;  %v857_v4 = vmul.f32 %v777_v63, %v457_v52  ;;  %v619_v7 = vadd.f32 35.0, %v539_v61  ;;  %v300_v11 = vmul.f32 %v2229_v1, %v2229_v1 }
  0xc4   : > { %1175 = vst [vmem:[%s1640_s16 + $0x1b8] sm:$0xff] %v1095_v2  ;;  %v936_v6 = vadd.f32 1.0, %v856_v60  ;;  %vm1017_vm9 = vcmp.lt.f32.partialorder %v2195_v31, 1.0  ;;  %v778_v10 = vadd.f32 -21.0, %v698_v3  ;;  %v459_v8 = vmul.f32 %v379_v5, %v2219_v53 }
  0xc5   : > { %v540_v13 = vmul.f32 -15.0, %v2229_v1  ;;  %v937_v15 = vadd.f32 1.0, %v857_v4  ;;  %v699_v9 = vmul.f32 %v619_v7, %v2219_v53  ;;  %v380_v18 = vmul.f32 %v300_v11, %v300_v11 }
  0xc6   : > { %v1096_v14 = vsel %vm1016_vm8, %v936_v6, 0.0  ;;  %v858_v16 = vmul.f32 %v778_v10, %v458_v0  ;;  %v301_v17 = vmul.f32 %v2239_v12, %v2239_v12  ;;  %v541_v23 = vmul.f32 -15.0, %v2239_v12  ;;  %v2296_v0 = vld [vmem:[%s1599_s15 + $0x210] sm:$0xff] }
  0xc7   : > { %1176 = vst [vmem:[%s1640_s16 + $0x1c0] sm:$0xff] %v1096_v14  ;;  %v620_v19 = vadd.f32 35.0, %v540_v13  ;;  %v1097_v24 = vsel %vm1017_vm9, %v937_v15, 0.0  ;;  %vm1018_vm10 = vcmp.lt.f32.partialorder %v2208_v40, 1.0  ;;  %v779_v22 = vadd.f32 -21.0, %v699_v9  ;;  %v2307_v13 = vld [vmem:[%s1599_s15 + $0x218] sm:$0xff] }
  0xc8   : > { %v460_v25 = vmul.f32 %v380_v18, %v2229_v1  ;;  %1177 = vst [vmem:[%s1640_s16 + $0x1c8] sm:$0xff] %v1097_v24  ;;  %v938_v26 = vadd.f32 1.0, %v858_v16  ;;  %v381_v27 = vmul.f32 %v301_v17, %v301_v17  ;;  %v621_v30 = vadd.f32 35.0, %v541_v23 }
  0xc9   : > { %v700_v21 = vmul.f32 %v620_v19, %v2229_v1  ;;  %v859_v31 = vmul.f32 %v779_v22, %v459_v8  ;;  %vm1019_vm11 = vcmp.lt.f32.partialorder %v2219_v53, 1.0  ;;  %v302_v29 = vmul.f32 %v2252_v20, %v2252_v20 }
  0xca   : > { %v542_v28 = vmul.f32 -15.0, %v2252_v20  ;;  %v1098_v35 = vsel %vm1018_vm10, %v938_v26, 0.0  ;;  %v461_v33 = vmul.f32 %v381_v27, %v2239_v12  ;;  %v701_v38 = vmul.f32 %v621_v30, %v2239_v12 }
  0xcb   : > { %v780_v32 = vadd.f32 -21.0, %v700_v21  ;;  %1178 = vst [vmem:[%s1640_s16 + $0x1d0] sm:$0xff] %v1098_v35  ;;  %v939_v36 = vadd.f32 1.0, %v859_v31  ;;  %v382_v39 = vmul.f32 %v302_v29, %v302_v29  ;;  %v303_v42 = vmul.f32 %v2263_v34, %v2263_v34 }
  0xcc   : > { %v622_v37 = vadd.f32 35.0, %v542_v28  ;;  %vm1020_vm12 = vcmp.lt.f32.partialorder %v2229_v1, 1.0  ;;  %v781_v43 = vadd.f32 -21.0, %v701_v38  ;;  %v543_v41 = vmul.f32 -15.0, %v2263_v34 }
  0xcd   : > { %v860_v40 = vmul.f32 %v780_v32, %v460_v25  ;;  %v1099_v46 = vsel %vm1019_vm11, %v939_v36, 0.0  ;;  %v462_v44 = vmul.f32 %v382_v39, %v2252_v20  ;;  %v383_v49 = vmul.f32 %v303_v42, %v303_v42  ;;  %v2317_v25 = vld [vmem:[%s1599_s15 + $0x220] sm:$0xff]  ;;  %v2327_v32 = vld [vmem:[%s1599_s15 + $0x228] sm:$0xff] }
  0xce   : > { %v702_v47 = vmul.f32 %v622_v37, %v2252_v20  ;;  %1179 = vst [vmem:[%s1640_s16 + $0x1d8] sm:$0xff] %v1099_v46  ;;  %v861_v48 = vmul.f32 %v781_v43, %v461_v33  ;;  %v623_v50 = vadd.f32 35.0, %v543_v41  ;;  %v304_v54 = vmul.f32 %v2273_v45, %v2273_v45 }
  0xcf   : > { %v940_v51 = vadd.f32 1.0, %v860_v40  ;;  %vm1021_vm13 = vcmp.lt.f32.partialorder %v2239_v12, 1.0  ;;  %v463_v52 = vmul.f32 %v383_v49, %v2263_v34  ;;  %v544_v57 = vmul.f32 -15.0, %v2273_v45 }
  0xd0   : > { %v782_v53 = vadd.f32 -21.0, %v702_v47  ;;  %v941_v59 = vadd.f32 1.0, %v861_v48  ;;  %v703_v56 = vmul.f32 %v623_v50, %v2263_v34  ;;  %v384_v62 = vmul.f32 %v304_v54, %v304_v54 }
  0xd1   : > { %v1100_v58 = vsel %vm1020_vm12, %v940_v51, 0.0  ;;  %v624_v63 = vadd.f32 35.0, %v544_v57  ;;  %v305_v61 = vmul.f32 %v2283_v55, %v2283_v55  ;;  %v545_v2 = vmul.f32 -15.0, %v2283_v55  ;;  %v2351_v57 = vld [vmem:[%s1599_s15 + $0x238] sm:$0xff] }
  0xd2   : > { %1180 = vst [vmem:[%s1640_s16 + $0x1e0] sm:$0xff] %v1100_v58  ;;  %v862_v60 = vmul.f32 %v782_v53, %v462_v44  ;;  %v1101_v3 = vsel %vm1021_vm13, %v941_v59, 0.0  ;;  %vm1022_vm14 = vcmp.lt.f32.partialorder %v2252_v20, 1.0  ;;  %v783_v1 = vadd.f32 -21.0, %v703_v56  ;;  %v2340_v44 = vld [vmem:[%s1599_s15 + $0x230] sm:$0xff] }
  0xd3   : > { %v464_v5 = vmul.f32 %v384_v62, %v2273_v45  ;;  %1181 = vst [vmem:[%s1640_s16 + $0x1e8] sm:$0xff] %v1101_v3  ;;  %v704_v4 = vmul.f32 %v624_v63, %v2273_v45  ;;  %v385_v7 = vmul.f32 %v305_v61, %v305_v61  ;;  %v625_v11 = vadd.f32 35.0, %v545_v2 }
  0xd4   : > { %v942_v6 = vadd.f32 1.0, %v862_v60  ;;  %v863_v12 = vmul.f32 %v783_v1, %v463_v52  ;;  %vm1023_vm15 = vcmp.lt.f32.partialorder %v2263_v34, 1.0  ;;  %v306_v10 = vmul.f32 %v2296_v0, %v2296_v0 }
  0xd5   : > { %v546_v8 = vmul.f32 -15.0, %v2296_v0  ;;  %v784_v15 = vadd.f32 -21.0, %v704_v4  ;;  %v465_v9 = vmul.f32 %v385_v7, %v2283_v55  ;;  %v705_v18 = vmul.f32 %v625_v11, %v2283_v55 }
  0xd6   : > { %v1102_v14 = vsel %vm1022_vm14, %v942_v6, 0.0  ;;  %v943_v16 = vadd.f32 1.0, %v863_v12  ;;  %v386_v19 = vmul.f32 %v306_v10, %v306_v10  ;;  %v307_v23 = vmul.f32 %v2307_v13, %v2307_v13 }
  0xd7   : > { %1182 = vst [vmem:[%s1640_s16 + $0x1f0] sm:$0xff] %v1102_v14  ;;  %v626_v17 = vadd.f32 35.0, %v546_v8  ;;  %v864_v20 = vmul.f32 %v784_v15, %v464_v5  ;;  %vm1024_vm0 = vcmp.lt.f32.partialorder %v2273_v45, 1.0  ;;  %v785_v24 = vadd.f32 -21.0, %v705_v18  ;;  %v2361_v5 = vld [vmem:[%s1599_s15 + $0x240] sm:$0xff]  ;;  %v2371_v15 = vld [vmem:[%s1599_s15 + $0x248] sm:$0xff] }
  0xd8   : > { %v547_v22 = vmul.f32 -15.0, %v2307_v13  ;;  %v1103_v26 = vsel %vm1023_vm15, %v943_v16, 0.0  ;;  %v466_v21 = vmul.f32 %v386_v19, %v2296_v0  ;;  %v387_v30 = vmul.f32 %v307_v23, %v307_v23 }
  0xd9   : > { %v706_v27 = vmul.f32 %v626_v17, %v2296_v0  ;;  %1183 = vst [vmem:[%s1640_s16 + $0x1f8] sm:$0xff] %v1103_v26  ;;  %v944_v31 = vadd.f32 1.0, %v864_v20  ;;  %v865_v29 = vmul.f32 %v785_v24, %v465_v9  ;;  %v308_v35 = vmul.f32 %v2317_v25, %v2317_v25 }
  0xda   : > { %v627_v28 = vadd.f32 35.0, %v547_v22  ;;  %vm1025_vm1 = vcmp.lt.f32.partialorder %v2283_v55, 1.0  ;;  %v467_v33 = vmul.f32 %v387_v30, %v2307_v13  ;;  %v548_v38 = vmul.f32 -15.0, %v2317_v25 }
  0xdb   : > { %v786_v34 = vadd.f32 -21.0, %v706_v27  ;;  %v1104_v36 = vsel %vm1024_vm0, %v944_v31, 0.0  ;;  %v945_v39 = vadd.f32 1.0, %v865_v29  ;;  %v388_v42 = vmul.f32 %v308_v35, %v308_v35 }
  0xdc   : > { %v707_v37 = vmul.f32 %v627_v28, %v2307_v13  ;;  %1184 = vst [vmem:[%s1640_s16 + $0x200] sm:$0xff] %v1104_v36  ;;  %v628_v43 = vadd.f32 35.0, %v548_v38  ;;  %v309_v41 = vmul.f32 %v2327_v32, %v2327_v32  ;;  %v549_v46 = vmul.f32 -15.0, %v2327_v32  ;;  %v2395_v38 = vld [vmem:[%s1599_s15 + $0x258] sm:$0xff] }
  0xdd   : > { %v866_v40 = vmul.f32 %v786_v34, %v466_v21  ;;  %v1105_v47 = vsel %vm1025_vm1, %v945_v39, 0.0  ;;  %vm1026_vm2 = vcmp.lt.f32.partialorder %v2296_v0, 1.0  ;;  %v468_v49 = vmul.f32 %v388_v42, %v2317_v25  ;;  %v2384_v21 = vld [vmem:[%s1599_s15 + $0x250] sm:$0xff] }
  0xde   : > { %v787_v45 = vadd.f32 -21.0, %v707_v37  ;;  %1185 = vst [vmem:[%s1640_s16 + $0x208] sm:$0xff] %v1105_v47  ;;  %v708_v48 = vmul.f32 %v628_v43, %v2317_v25  ;;  %v389_v50 = vmul.f32 %v309_v41, %v309_v41  ;;  %v629_v54 = vadd.f32 35.0, %v549_v46 }
  0xdf   : > { %v946_v51 = vadd.f32 1.0, %v866_v40  ;;  %vm1027_vm3 = vcmp.lt.f32.partialorder %v2307_v13, 1.0  ;;  %v310_v53 = vmul.f32 %v2340_v44, %v2340_v44  ;;  %v550_v52 = vmul.f32 -15.0, %v2340_v44 }
  0xe0   : > { %v867_v55 = vmul.f32 %v787_v45, %v467_v33  ;;  %v788_v59 = vadd.f32 -21.0, %v708_v48  ;;  %v469_v56 = vmul.f32 %v389_v50, %v2327_v32  ;;  %v709_v62 = vmul.f32 %v629_v54, %v2327_v32 }
  0xe1   : > { %v1106_v58 = vsel %vm1026_vm2, %v946_v51, 0.0  ;;  %v390_v63 = vmul.f32 %v310_v53, %v310_v53  ;;  %v630_v61 = vadd.f32 35.0, %v550_v52  ;;  %v311_v2 = vmul.f32 %v2351_v57, %v2351_v57 }
  0xe2   : > { %1186 = vst [vmem:[%s1640_s16 + $0x210] sm:$0xff] %v1106_v58  ;;  %v947_v60 = vadd.f32 1.0, %v867_v55  ;;  %v868_v0 = vmul.f32 %v788_v59, %v468_v49  ;;  %vm1028_vm4 = vcmp.lt.f32.partialorder %v2317_v25, 1.0  ;;  %v789_v3 = vadd.f32 -21.0, %v709_v62  ;;  %v2405_v49 = vld [vmem:[%s1599_s15 + $0x260] sm:$0xff]  ;;  %v237_v59 = vld [vmem:[%s1599_s15 + $0x268] sm:$0xff] }
  0xe3   : > { %v551_v1 = vmul.f32 -15.0, %v2351_v57  ;;  %v470_v4 = vmul.f32 %v390_v63, %v2340_v44  ;;  %v710_v7 = vmul.f32 %v630_v61, %v2340_v44  ;;  %v391_v11 = vmul.f32 %v311_v2, %v311_v2 }
  0xe4   : > { %v1107_v6 = vsel %vm1027_vm3, %v947_v60, 0.0  ;;  %v948_v12 = vadd.f32 1.0, %v868_v0  ;;  %v869_v10 = vmul.f32 %v789_v3, %v469_v56  ;;  %v312_v14 = vmul.f32 %v2361_v5, %v2361_v5 }
  0xe5   : > { %1187 = vst [vmem:[%s1640_s16 + $0x218] sm:$0xff] %v1107_v6  ;;  %v631_v8 = vadd.f32 35.0, %v551_v1  ;;  %vm1029_vm5 = vcmp.lt.f32.partialorder %v2327_v32, 1.0  ;;  %v790_v13 = vadd.f32 -21.0, %v710_v7  ;;  %v471_v9 = vmul.f32 %v391_v11, %v2351_v57 }
  0xe6   : > { %v552_v18 = vmul.f32 -15.0, %v2361_v5  ;;  %v1108_v16 = vsel %vm1028_vm4, %v948_v12, 0.0  ;;  %v949_v19 = vadd.f32 1.0, %v869_v10  ;;  %v392_v23 = vmul.f32 %v312_v14, %v312_v14 }
  0xe7   : > { %v711_v17 = vmul.f32 %v631_v8, %v2351_v57  ;;  %1188 = vst [vmem:[%s1640_s16 + $0x220] sm:$0xff] %v1108_v16  ;;  %v870_v20 = vmul.f32 %v790_v13, %v470_v4  ;;  %v313_v22 = vmul.f32 %v2371_v15, %v2371_v15  ;;  %v553_v26 = vmul.f32 -15.0, %v2371_v15  ;;  %v238_v4 = vld [vmem:[%s1599_s15 + $0x270] sm:$0xff] }
  0xe8   : > { %v632_v24 = vadd.f32 35.0, %v552_v18  ;;  %v1109_v27 = vsel %vm1029_vm5, %v949_v19, 0.0  ;;  %vm1030_vm6 = vcmp.lt.f32.partialorder %v2340_v44, 1.0  ;;  %v472_v30 = vmul.f32 %v392_v23, %v2361_v5  ;;  %v239_v18 = vld [vmem:[%s1599_s15 + $0x278] sm:$0xff] }
  0xe9   : > { %v791_v25 = vadd.f32 -21.0, %v711_v17  ;;  %1189 = vst [vmem:[%s1640_s16 + $0x228] sm:$0xff] %v1109_v27  ;;  %v950_v31 = vadd.f32 1.0, %v870_v20  ;;  %v393_v28 = vmul.f32 %v313_v22, %v313_v22  ;;  %v633_v35 = vadd.f32 35.0, %v553_v26 }
  0xea   : > { %v712_v29 = vmul.f32 %v632_v24, %v2361_v5  ;;  %vm1031_vm7 = vcmp.lt.f32.partialorder %v2351_v57, 1.0  ;;  %v314_v34 = vmul.f32 %v2384_v21, %v2384_v21  ;;  %v554_v33 = vmul.f32 -15.0, %v2384_v21 }
  0xeb   : > { %v871_v32 = vmul.f32 %v791_v25, %v471_v9  ;;  %v1110_v36 = vsel %vm1030_vm6, %v950_v31, 0.0  ;;  %v473_v37 = vmul.f32 %v393_v28, %v2371_v15  ;;  %v713_v42 = vmul.f32 %v633_v35, %v2371_v15 }
  0xec   : > { %v792_v39 = vadd.f32 -21.0, %v712_v29  ;;  %1190 = vst [vmem:[%s1640_s16 + $0x230] sm:$0xff] %v1110_v36  ;;  %v394_v43 = vmul.f32 %v314_v34, %v314_v34  ;;  %v634_v41 = vadd.f32 35.0, %v554_v33  ;;  %v315_v46 = vmul.f32 %v2395_v38, %v2395_v38 }
  0xed   : > { %v951_v40 = vadd.f32 1.0, %v871_v32  ;;  %vm1032_vm8 = vcmp.lt.f32.partialorder %v2361_v5, 1.0  ;;  %v793_v47 = vadd.f32 -21.0, %v713_v42  ;;  %v555_v45 = vmul.f32 -15.0, %v2395_v38 }
  0xee   : > { %v872_v44 = vmul.f32 %v792_v39, %v472_v30  ;;  %v474_v48 = vmul.f32 %v394_v43, %v2384_v21  ;;  %v714_v50 = vmul.f32 %v634_v41, %v2384_v21  ;;  %v395_v54 = vmul.f32 %v315_v46, %v315_v46 }
  0xef   : > { %v1111_v51 = vsel %vm1031_vm7, %v951_v40, 0.0  ;;  %v873_v53 = vmul.f32 %v793_v47, %v473_v37  ;;  %v635_v52 = vadd.f32 35.0, %v555_v45  ;;  %v316_v58 = vmul.f32 %v2405_v49, %v2405_v49 }
  0xf0   : > { %1191 = vst [vmem:[%s1640_s16 + $0x238] sm:$0xff] %v1111_v51  ;;  %v952_v55 = vadd.f32 1.0, %v872_v44  ;;  %vm1033_vm9 = vcmp.lt.f32.partialorder %v2371_v15, 1.0  ;;  %v794_v56 = vadd.f32 -21.0, %v714_v50  ;;  %v475_v57 = vmul.f32 %v395_v54, %v2395_v38 }
  0xf1   : > { %v556_v62 = vmul.f32 -15.0, %v2405_v49  ;;  %v953_v63 = vadd.f32 1.0, %v873_v53  ;;  %v715_v61 = vmul.f32 %v635_v52, %v2395_v38  ;;  %v396_v2 = vmul.f32 %v316_v58, %v316_v58 }
  0xf2   : > { %v1112_v60 = vsel %vm1032_vm8, %v952_v55, 0.0  ;;  %v874_v0 = vmul.f32 %v794_v56, %v474_v48  ;;  %v317_v1 = vmul.f32 %v237_v59, %v237_v59  ;;  %v557_v6 = vmul.f32 -15.0, %v237_v59 }
  0xf3   : > { %1192 = vst [vmem:[%s1640_s16 + $0x240] sm:$0xff] %v1112_v60  ;;  %v636_v3 = vadd.f32 35.0, %v556_v62  ;;  %v1113_v7 = vsel %vm1033_vm9, %v953_v63, 0.0  ;;  %vm1034_vm10 = vcmp.lt.f32.partialorder %v2384_v21, 1.0  ;;  %v795_v11 = vadd.f32 -21.0, %v715_v61 }
  0xf4   : > { %v476_v12 = vmul.f32 %v396_v2, %v2405_v49  ;;  %1193 = vst [vmem:[%s1640_s16 + $0x248] sm:$0xff] %v1113_v7  ;;  %v954_v5 = vadd.f32 1.0, %v874_v0  ;;  %v397_v8 = vmul.f32 %v317_v1, %v317_v1  ;;  %v637_v14 = vadd.f32 35.0, %v557_v6 }
  0xf5   : > { %v716_v10 = vmul.f32 %v636_v3, %v2405_v49  ;;  %v875_v15 = vmul.f32 %v795_v11, %v475_v57  ;;  %vm1035_vm11 = vcmp.lt.f32.partialorder %v2395_v38, 1.0  ;;  %v318_v13 = vmul.f32 %v238_v4, %v238_v4 }
  0xf6   : > { %v558_v9 = vmul.f32 -15.0, %v238_v4  ;;  %v1114_v16 = vsel %vm1034_vm10, %v954_v5, 0.0  ;;  %v477_v17 = vmul.f32 %v397_v8, %v237_v59  ;;  %v717_v23 = vmul.f32 %v637_v14, %v237_v59 }
  0xf7   : > { %v796_v19 = vadd.f32 -21.0, %v716_v10  ;;  %1194 = vst [vmem:[%s1640_s16 + $0x250] sm:$0xff] %v1114_v16  ;;  %v955_v20 = vadd.f32 1.0, %v875_v15  ;;  %v398_v24 = vmul.f32 %v318_v13, %v318_v13  ;;  %v319_v26 = vmul.f32 %v239_v18, %v239_v18 }
  0xf8   : > { %v638_v22 = vadd.f32 35.0, %v558_v9  ;;  %vm1036_vm12 = vcmp.lt.f32.partialorder %v2405_v49, 1.0  ;;  %v797_v27 = vadd.f32 -21.0, %v717_v23  ;;  %v559_v25 = vmul.f32 -15.0, %v239_v18 }
  0xf9   : > { %v876_v21 = vmul.f32 %v796_v19, %v476_v12  ;;  %v1115_v30 = vsel %vm1035_vm11, %v955_v20, 0.0  ;;  %v478_v31 = vmul.f32 %v398_v24, %v238_v4  ;;  %v399_v28 = vmul.f32 %v319_v26, %v319_v26 }
  0xfa   : > { %v718_v29 = vmul.f32 %v638_v22, %v238_v4  ;;  %1195 = vst [vmem:[%s1640_s16 + $0x258] sm:$0xff] %v1115_v30  ;;  %v877_v32 = vmul.f32 %v797_v27, %v477_v17  ;;  %v639_v34 = vadd.f32 35.0, %v559_v25  ;;  %vm1037_vm13 = vcmp.lt.f32.partialorder %v237_v59, 1.0 }
  0xfb   : > { %v956_v35 = vadd.f32 1.0, %v876_v21  ;;  %v479_v37 = vmul.f32 %v399_v28, %v239_v18  ;;  %vm1038_vm14 = vcmp.lt.f32.partialorder %v238_v4, 1.0  ;;  %vm1039_vm15 = vcmp.lt.f32.partialorder %v239_v18, 1.0 }
  0xfc   : > { %v798_v33 = vadd.f32 -21.0, %v718_v29  ;;  %v957_v39 = vadd.f32 1.0, %v877_v32  ;;  %v719_v42 = vmul.f32 %v639_v34, %v239_v18 }
  0xfd   : > { %v1116_v36 = vsel %vm1036_vm12, %v956_v35, 0.0 }
  0xfe   : > { %1196 = vst [vmem:[%s1640_s16 + $0x260] sm:$0xff] %v1116_v36  ;;  %v878_v38 = vmul.f32 %v798_v33, %v478_v31  ;;  %v1117_v40 = vsel %vm1037_vm13, %v957_v39, 0.0  ;;  %v799_v43 = vadd.f32 -21.0, %v719_v42 }
  0xff   : > { %1197 = vst [vmem:[%s1640_s16 + $0x268] sm:$0xff] %v1117_v40 }
 0x100   : > { %v958_v41 = vadd.f32 1.0, %v878_v38  ;;  %v879_v46 = vmul.f32 %v799_v43, %v479_v37 }
 0x102   : > { %v1118_v44 = vsel %vm1038_vm14, %v958_v41, 0.0  ;;  %v959_v47 = vadd.f32 1.0, %v879_v46 }
 0x103   : > { %1198 = vst [vmem:[%s1640_s16 + $0x270] sm:$0xff] %v1118_v44 }
 0x104   : > { %v1119_v45 = vsel %vm1039_vm15, %v959_v47, 0.0 }
 0x105   : > { %1199 = vst [vmem:[%s1640_s16 + $0x278] sm:$0xff] %v1119_v45 }
 0x106   : > { %1448 = shalt.err (!%p1445_p13)
}
 0x107   : > { %s1507_s4 = smov 256   ;;  %s1508_s5 = smov 16  }
 0x108   : > { %1327 = dma.vmem_to_hbm [thread:$0]  (%p1570_p9), %s1217_s23, 10240, %s1219_s24, %s1201_s25, %s1507_s4, %s1507_s4, %s1508_s5  }
 0x109 PF: > { %s1233_s12 = sand.u32 1, %s1483_s6   ;;  %p1334_p0 = pnand %p1309_p12, %p1577_p11 }
 0x10a   : > { %s1234_s13 = scalar_lea.sflag [#allocation4], %s1233_s12 }
 0x10b   : > { %p1335_p1 = pneg %p1334_p0 }
 0x10d   : > { %1478 = dma.done.wait (%p1335_p1), %s1234_s13, 10240  }
 0x10e   : > { %1480 = vsyncadd (%p1335_p1), %s1234_s13, 4294957056  ;;  %s17_s11 = sadd.s32 1, %s1503_s11   ;;  %s2483_s6 = smov %s1487_s7 }
 0x10f   : > { %p14_p2 = scmp.ge.s32.totalorder %s17_s11, 4   ;;  %s2484_s7 = smov %s1491_s8 }
 0x110   : > { %s2485_s8 = smov %s1575_s20  ;;  %s2486_s9 = smov %s1499_s10 }
 0x111   : > { %s2487_s10 = smov %s2489_s14  ;;  %16 = sbr.rel (!%p14_p2) target bundleno = 6 (0x6), region = 69 }
 0x116   :  { %1240 = vsyncpa [#allocation3], 1 }
 0x117   :  { %1242 = vsyncpa [#allocation3 + $0x1], 1 }
 0x118   :  { %1243 = vsyncpa [#allocation4], 1 }
 0x119   :  { %1245 = vsyncpa [#allocation4 + $0x1], 1 }

</bundles_post_ra>
